<compile_context>
chip_gen: v5e
topology: v5e:2x2
jax: 0.10.0
libtpu: 0.0.40
codegen_flags: <defaults>
</compile_context>

<pallas_src>
import functools

import jax
import jax.numpy as jnp
from jax.experimental import pallas as pl
from jax.experimental.pallas import tpu as pltpu

HIDDEN = 100   # fixed by the module definition
LANE = 128
SUBLANE = 8


def _round_up(x, m):
    return ((x + m - 1) // m) * m


# --------------------------------------------------------------------------
# Kernel
# --------------------------------------------------------------------------
def betavae_kernel(
    x_ref, eps_ref,                 # [TB, Dp] bf16, [TB, Lz] bf16
    w1_ref, b1_ref,                 # encoder L1:    [Dp, Hp] bf16, [1, Hp] f32
    w2_ref, b2_ref,                 # encoder L2:    [Hp, Hp] bf16, [1, Hp] f32
    wh_ref, bh_ref,                 # packed mu|ls:  [Hp, Lz] bf16, [1, Lz] f32
    wd1_ref, bd1_ref,               # decoder L1:    [Lz, Hp] bf16, [1, Hp] f32
    wd2_ref, bd2_ref,               # decoder L2:    [Hp, Dp] bf16, [1, Dp] f32
    xrec_ref, muls_ref,             # [TB, Dp] f32, [TB, Lz] f32
    *, ls_off, latent_dim,
):
    f32 = jnp.float32
    bf16 = jnp.bfloat16

    x = x_ref[...]                                               # bf16

    # ----- encoder -----
    h1 = jnp.dot(x, w1_ref[...], preferred_element_type=f32) + b1_ref[...]
    h1 = jnp.maximum(h1, 0.0)                                    # ReLU (f32 VPU)
    h = jnp.dot(h1.astype(bf16), w2_ref[...], preferred_element_type=f32) + b2_ref[...]

    # packed mu | log_sigma head: one MXU pass, single 128-lane group
    muls = jnp.dot(h.astype(bf16), wh_ref[...], preferred_element_type=f32) + bh_ref[...]

    # log_sigma lives in lanes [ls_off, ls_off+L); rotate it down onto lanes
    # [0, L) so it aligns with mu and eps.  ls_off == Lz/2, so the shift is
    # a half-rotation (direction-agnostic).  XLU op -> effectively free.
    ls_aligned = pltpu.roll(muls, shift=ls_off, axis=1)

    # ----- reparameterization: z = mu + exp(log_sigma) * eps (f32) -----
    z = muls + jnp.exp(ls_aligned) * eps_ref[...].astype(f32)
    # keep only the true latent lanes (padded lanes would otherwise carry
    # garbage / potential NaNs into the decoder matmul)
    lane = jax.lax.broadcasted_iota(jnp.int32, z.shape, 1)
    z = jnp.where(lane < latent_dim, z, 0.0)

    # ----- decoder -----
    d1 = jnp.dot(z.astype(bf16), wd1_ref[...], preferred_element_type=f32) + bd1_ref[...]
    d1 = jnp.maximum(d1, 0.0)                                    # ReLU
    x_recon = jnp.dot(d1.astype(bf16), wd2_ref[...], preferred_element_type=f32) + bd2_ref[...]

    xrec_ref[...] = x_recon
    muls_ref[...] = muls


# --------------------------------------------------------------------------
# Parameter packing: lane padding, packed mu|logsigma head, bf16 weights
# --------------------------------------------------------------------------
def pack_params(p, input_dim, latent_dim):
    D_p = _round_up(input_dim, LANE)
    H_p = _round_up(HIDDEN, LANE)
    # Single padded latent width used for the packed head, eps, and z.
    # Guarantees ls_off = L_z // 2 >= latent_dim, so mu and log_sigma fit
    # side-by-side without overlap.
    L_z = _round_up(2 * latent_dim, LANE)
    ls_off = L_z // 2

    def pad_w(w, rows, cols):
        out = jnp.zeros((rows, cols), jnp.float32)
        return out.at[: w.shape[0], : w.shape[1]].set(w).astype(jnp.bfloat16)

    def pad_b(b, cols):
        out = jnp.zeros((1, cols), jnp.float32)
        return out.at[:, : b.shape[1]].set(b)

    w1 = pad_w(p["w1"], D_p, H_p)
    b1 = pad_b(p["b1"], H_p)
    w2 = pad_w(p["w2"], H_p, H_p)
    b2 = pad_b(p["b2"], H_p)

    # packed mu | logsigma head: mu -> lanes [0, L), logsigma -> [ls_off, ls_off+L)
    wh = jnp.zeros((H_p, L_z), jnp.float32)
    wh = wh.at[:HIDDEN, :latent_dim].set(p["wmu"])
    wh = wh.at[:HIDDEN, ls_off: ls_off + latent_dim].set(p["wls"])
    wh = wh.astype(jnp.bfloat16)
    bh = jnp.zeros((1, L_z), jnp.float32)
    bh = bh.at[:, :latent_dim].set(p["bmu"])
    bh = bh.at[:, ls_off: ls_off + latent_dim].set(p["bls"])

    wd1 = pad_w(p["wd1"], L_z, H_p)      # rows >= latent_dim are zero
    bd1 = pad_b(p["bd1"], H_p)
    wd2 = pad_w(p["wd2"], H_p, D_p)
    bd2 = pad_b(p["bd2"], D_p)

    return dict(
        w1=w1, b1=b1, w2=w2, b2=b2, wh=wh, bh=bh,
        wd1=wd1, bd1=bd1, wd2=wd2, bd2=bd2,
        dims=(input_dim, latent_dim, D_p, H_p, L_z, ls_off),
    )


# --------------------------------------------------------------------------
# Wrapper
# --------------------------------------------------------------------------
def betavae_forward(x, eps, packed):
    D, L, D_p, H_p, L_z, ls_off = packed["dims"]
    B = x.shape[0]

    # Batch tile: as large as possible (up to 1024 rows) while keeping >= 2
    # grid steps so v7x's two TensorCores both get work; multiple of 8 for
    # sublane alignment.
    B_p8 = _round_up(B, SUBLANE)
    TB = min(1024, _round_up(max(B_p8 // 2, SUBLANE), SUBLANE))
    B_p = _round_up(B_p8, TB)
    grid = (B_p // TB,)

    # pad + cast streamed activations (zero-padded lanes/rows)
    x_p = jnp.zeros((B_p, D_p), jnp.bfloat16).at[:B, :D].set(x.astype(jnp.bfloat16))
    eps_p = jnp.zeros((B_p, L_z), jnp.bfloat16).at[:B, :L].set(eps.astype(jnp.bfloat16))

    def resident(arr):  # weights/biases: same block every step -> DMA'd once
        return pl.BlockSpec(arr.shape, lambda i: (0, 0))

    in_specs = [
        pl.BlockSpec((TB, D_p), lambda i: (i, 0)),       # x tile
        pl.BlockSpec((TB, L_z), lambda i: (i, 0)),       # eps tile
        resident(packed["w1"]), resident(packed["b1"]),
        resident(packed["w2"]), resident(packed["b2"]),
        resident(packed["wh"]), resident(packed["bh"]),
        resident(packed["wd1"]), resident(packed["bd1"]),
        resident(packed["wd2"]), resident(packed["bd2"]),
    ]
    out_shapes = (
        jax.ShapeDtypeStruct((B_p, D_p), jnp.float32),   # x_recon (padded)
        jax.ShapeDtypeStruct((B_p, L_z), jnp.float32),   # packed mu | log_sigma
    )
    out_specs = (
        pl.BlockSpec((TB, D_p), lambda i: (i, 0)),
        pl.BlockSpec((TB, L_z), lambda i: (i, 0)),
    )

    kernel = functools.partial(betavae_kernel, ls_off=ls_off, latent_dim=L)

    xrec_p, muls_p = pl.pallas_call(
        kernel,
        out_shape=out_shapes,
        grid=grid,
        in_specs=in_specs,
        out_specs=out_specs,
        compiler_params=pltpu.CompilerParams(
            dimension_semantics=("parallel",),
        ),
    )(
        x_p, eps_p,
        packed["w1"], packed["b1"], packed["w2"], packed["b2"],
        packed["wh"], packed["bh"],
        packed["wd1"], packed["bd1"], packed["wd2"], packed["bd2"],
    )

    x_recon = xrec_p[:B, :D]
    mu = muls_p[:B, :L]
    log_sigma = muls_p[:B, ls_off: ls_off + L]
    return x_recon, mu, log_sigma


# --------------------------------------------------------------------------
# Init + reference
# --------------------------------------------------------------------------
def init_params(key, input_dim, latent_dim):
    """PyTorch-style uniform(-1/sqrt(fan_in), 1/sqrt(fan_in)) init, [in, out] layout."""
    def linear(key, fan_in, fan_out):
        kw, kb = jax.random.split(key)
        bound = 1.0 / jnp.sqrt(fan_in)
        w = jax.random.uniform(kw, (fan_in, fan_out), jnp.float32, -bound, bound)
        b = jax.random.uniform(kb, (1, fan_out), jnp.float32, -bound, bound)
        return w, b

    keys = jax.random.split(key, 6)
    w1, b1 = linear(keys[0], input_dim, HIDDEN)
    w2, b2 = linear(keys[1], HIDDEN, HIDDEN)
    wmu, bmu = linear(keys[2], HIDDEN, latent_dim)
    wls, bls = linear(keys[3], HIDDEN, latent_dim)
    wd1, bd1 = linear(keys[4], latent_dim, HIDDEN)
    wd2, bd2 = linear(keys[5], HIDDEN, input_dim)
    return dict(w1=w1, b1=b1, w2=w2, b2=b2, wmu=wmu, bmu=bmu,
                wls=wls, bls=bls, wd1=wd1, bd1=bd1, wd2=wd2, bd2=bd2)


def betavae_reference(x, eps, p):
    """Pure-JAX reference mirroring the kernel's bf16-matmul / f32-accum numerics
    (including the bf16-quantized noise the kernel consumes)."""
    bf16 = jnp.bfloat16

    def mm(a, w):
        return jnp.dot(a.astype(bf16), w.astype(bf16),
                       preferred_element_type=jnp.float32)

    eps_q = eps.astype(bf16).astype(jnp.float32)
    h1 = jnp.maximum(mm(x, p["w1"]) + p["b1"], 0.0)
    h = mm(h1, p["w2"]) + p["b2"]
    mu = mm(h, p["wmu"]) + p["bmu"]
    ls = mm(h, p["wls"]) + p["bls"]
    z = mu + jnp.exp(ls) * eps_q
    d1 = jnp.maximum(mm(z, p["wd1"]) + p["bd1"], 0.0)
    xr = mm(d1, p["wd2"]) + p["bd2"]
    return xr, mu, ls


# --------------------------------------------------------------------------
if __name__ == "__main__":
    B, INPUT_DIM, LATENT_DIM = 512, 64, 16   # grid of 2 -> pipelined / megacore

    key = jax.random.PRNGKey(0)
    k_x, k_eps, k_params = jax.random.split(key, 3)

    x = jax.random.normal(k_x, (B, INPUT_DIM), dtype=jnp.float32)
    eps = jax.random.normal(k_eps, (B, LATENT_DIM), dtype=jnp.float32)
    params = init_params(k_params, INPUT_DIM, LATENT_DIM)
    packed = pack_params(params, INPUT_DIM, LATENT_DIM)

    run = jax.jit(lambda xx, ee: betavae_forward(xx, ee, packed))
    x_recon, mu, log_sigma = jax.block_until_ready(run(x, eps))

    xr_ref, mu_ref, ls_ref = betavae_reference(x, eps, params)
    assert x_recon.shape == (B, INPUT_DIM)
    assert mu.shape == (B, LATENT_DIM)
    assert log_sigma.shape == (B, LATENT_DIM)
    assert jnp.allclose(mu, mu_ref, atol=2e-3, rtol=2e-3)
    assert jnp.allclose(log_sigma, ls_ref, atol=2e-3, rtol=2e-3)
    assert jnp.allclose(x_recon, xr_ref, atol=2e-3, rtol=2e-3)

    print("KERNEL_OK")
</pallas_src>

<mosaic_0001>
module attributes {stable_mosaic.version = 11 : i64} {
  func.func @betavae_kernel(%arg0: i32, %arg1: memref<256x128xbf16, #tpu.memory_space<vmem>>, %arg2: memref<256x128xbf16, #tpu.memory_space<vmem>>, %arg3: memref<128x128xbf16, #tpu.memory_space<vmem>>, %arg4: memref<1x128xf32, #tpu.memory_space<vmem>>, %arg5: memref<128x128xbf16, #tpu.memory_space<vmem>>, %arg6: memref<1x128xf32, #tpu.memory_space<vmem>>, %arg7: memref<128x128xbf16, #tpu.memory_space<vmem>>, %arg8: memref<1x128xf32, #tpu.memory_space<vmem>>, %arg9: memref<128x128xbf16, #tpu.memory_space<vmem>>, %arg10: memref<1x128xf32, #tpu.memory_space<vmem>>, %arg11: memref<128x128xbf16, #tpu.memory_space<vmem>>, %arg12: memref<1x128xf32, #tpu.memory_space<vmem>>, %arg13: memref<256x128xf32, #tpu.memory_space<vmem>>, %arg14: memref<256x128xf32, #tpu.memory_space<vmem>>) attributes {dimension_semantics = [#tpu.dimension_semantics<parallel>], iteration_bounds = array<i64: 2>, scalar_prefetch = 0 : i64, scratch_operands = 0 : i64, tpu.core_type = #tpu.core_type<tc>, window_params = [{transform_indices = @transform_0, window_bounds = array<i64: 256, 128>}, {transform_indices = @transform_1, window_bounds = array<i64: 256, 128>}, {pipeline_mode = #tpu.pipeline_mode<synchronous>, transform_indices = @transform_2, window_bounds = array<i64: 128, 128>}, {pipeline_mode = #tpu.pipeline_mode<synchronous>, transform_indices = @transform_3, window_bounds = array<i64: 1, 128>}, {pipeline_mode = #tpu.pipeline_mode<synchronous>, transform_indices = @transform_4, window_bounds = array<i64: 128, 128>}, {pipeline_mode = #tpu.pipeline_mode<synchronous>, transform_indices = @transform_5, window_bounds = array<i64: 1, 128>}, {pipeline_mode = #tpu.pipeline_mode<synchronous>, transform_indices = @transform_6, window_bounds = array<i64: 128, 128>}, {pipeline_mode = #tpu.pipeline_mode<synchronous>, transform_indices = @transform_7, window_bounds = array<i64: 1, 128>}, {pipeline_mode = #tpu.pipeline_mode<synchronous>, transform_indices = @transform_8, window_bounds = array<i64: 128, 128>}, {pipeline_mode = #tpu.pipeline_mode<synchronous>, transform_indices = @transform_9, window_bounds = array<i64: 1, 128>}, {pipeline_mode = #tpu.pipeline_mode<synchronous>, transform_indices = @transform_10, window_bounds = array<i64: 128, 128>}, {pipeline_mode = #tpu.pipeline_mode<synchronous>, transform_indices = @transform_11, window_bounds = array<i64: 1, 128>}, {transform_indices = @transform_12, window_bounds = array<i64: 256, 128>}, {transform_indices = @transform_13, window_bounds = array<i64: 256, 128>}]} {
    %c0 = arith.constant 0 : index
    %c0_0 = arith.constant 0 : index
    %0 = vector.load %arg1[%c0, %c0_0] : memref<256x128xbf16, #tpu.memory_space<vmem>>, vector<256x128xbf16>
    %c0_1 = arith.constant 0 : index
    %c0_2 = arith.constant 0 : index
    %1 = vector.load %arg3[%c0_1, %c0_2] : memref<128x128xbf16, #tpu.memory_space<vmem>>, vector<128x128xbf16>
    %cst = arith.constant dense<0.000000e+00> : vector<256x128xf32>
    %2 = tpu.matmul %0, %1, %cst {dimension_numbers = #tpu.dot_dimension_numbers<[1], [0], [0], [1], [0, 0, 1, 1], [], []>} : vector<256x128xbf16>, vector<128x128xbf16>, vector<256x128xf32> -> vector<256x128xf32>
    %c0_3 = arith.constant 0 : index
    %c0_4 = arith.constant 0 : index
    %3 = vector.load %arg4[%c0_3, %c0_4] : memref<1x128xf32, #tpu.memory_space<vmem>>, vector<1x128xf32>
    %4 = vector.broadcast %3 : vector<1x128xf32> to vector<256x128xf32>
    %5 = arith.addf %2, %4 : vector<256x128xf32>
    %cst_5 = arith.constant 0.000000e+00 : f32
    %6 = vector.broadcast %cst_5 : f32 to vector<256x128xf32>
    %7 = arith.maximumf %5, %6 : vector<256x128xf32>
    %8 = arith.truncf %7 : vector<256x128xf32> to vector<256x128xbf16>
    %c0_6 = arith.constant 0 : index
    %c0_7 = arith.constant 0 : index
    %9 = vector.load %arg5[%c0_6, %c0_7] : memref<128x128xbf16, #tpu.memory_space<vmem>>, vector<128x128xbf16>
    %cst_8 = arith.constant dense<0.000000e+00> : vector<256x128xf32>
    %10 = tpu.matmul %8, %9, %cst_8 {dimension_numbers = #tpu.dot_dimension_numbers<[1], [0], [0], [1], [0, 0, 1, 1], [], []>} : vector<256x128xbf16>, vector<128x128xbf16>, vector<256x128xf32> -> vector<256x128xf32>
    %c0_9 = arith.constant 0 : index
    %c0_10 = arith.constant 0 : index
    %11 = vector.load %arg6[%c0_9, %c0_10] : memref<1x128xf32, #tpu.memory_space<vmem>>, vector<1x128xf32>
    %12 = vector.broadcast %11 : vector<1x128xf32> to vector<256x128xf32>
    %13 = arith.addf %10, %12 : vector<256x128xf32>
    %14 = arith.truncf %13 : vector<256x128xf32> to vector<256x128xbf16>
    %c0_11 = arith.constant 0 : index
    %c0_12 = arith.constant 0 : index
    %15 = vector.load %arg7[%c0_11, %c0_12] : memref<128x128xbf16, #tpu.memory_space<vmem>>, vector<128x128xbf16>
    %cst_13 = arith.constant dense<0.000000e+00> : vector<256x128xf32>
    %16 = tpu.matmul %14, %15, %cst_13 {dimension_numbers = #tpu.dot_dimension_numbers<[1], [0], [0], [1], [0, 0, 1, 1], [], []>} : vector<256x128xbf16>, vector<128x128xbf16>, vector<256x128xf32> -> vector<256x128xf32>
    %c0_14 = arith.constant 0 : index
    %c0_15 = arith.constant 0 : index
    %17 = vector.load %arg8[%c0_14, %c0_15] : memref<1x128xf32, #tpu.memory_space<vmem>>, vector<1x128xf32>
    %18 = vector.broadcast %17 : vector<1x128xf32> to vector<256x128xf32>
    %19 = arith.addf %16, %18 : vector<256x128xf32>
    %c64_i32 = arith.constant 64 : i32
    %20 = tpu.dynamic_rotate %19 by %c64_i32 dim 1 : vector<256x128xf32>, i32 -> vector<256x128xf32>
    %21 = math.exp %20 : vector<256x128xf32>
    %c0_16 = arith.constant 0 : index
    %c0_17 = arith.constant 0 : index
    %22 = vector.load %arg2[%c0_16, %c0_17] : memref<256x128xbf16, #tpu.memory_space<vmem>>, vector<256x128xbf16>
    %23 = arith.extf %22 : vector<256x128xbf16> to vector<256x128xf32>
    %24 = arith.mulf %21, %23 : vector<256x128xf32>
    %25 = arith.addf %19, %24 : vector<256x128xf32>
    %26 = tpu.iota {dimensions = array<i32: 1>} : vector<256x128xi32>
    %c16_i32 = arith.constant 16 : i32
    %27 = vector.broadcast %c16_i32 : i32 to vector<256x128xi32>
    %28 = arith.cmpi slt, %26, %27 : vector<256x128xi32>
    %cst_18 = arith.constant 0.000000e+00 : f32
    %29 = vector.broadcast %cst_18 : f32 to vector<256x128xf32>
    %30 = arith.select %28, %25, %29 : vector<256x128xi1>, vector<256x128xf32>
    %31 = arith.truncf %30 : vector<256x128xf32> to vector<256x128xbf16>
    %c0_19 = arith.constant 0 : index
    %c0_20 = arith.constant 0 : index
    %32 = vector.load %arg9[%c0_19, %c0_20] : memref<128x128xbf16, #tpu.memory_space<vmem>>, vector<128x128xbf16>
    %cst_21 = arith.constant dense<0.000000e+00> : vector<256x128xf32>
    %33 = tpu.matmul %31, %32, %cst_21 {dimension_numbers = #tpu.dot_dimension_numbers<[1], [0], [0], [1], [0, 0, 1, 1], [], []>} : vector<256x128xbf16>, vector<128x128xbf16>, vector<256x128xf32> -> vector<256x128xf32>
    %c0_22 = arith.constant 0 : index
    %c0_23 = arith.constant 0 : index
    %34 = vector.load %arg10[%c0_22, %c0_23] : memref<1x128xf32, #tpu.memory_space<vmem>>, vector<1x128xf32>
    %35 = vector.broadcast %34 : vector<1x128xf32> to vector<256x128xf32>
    %36 = arith.addf %33, %35 : vector<256x128xf32>
    %cst_24 = arith.constant 0.000000e+00 : f32
    %37 = vector.broadcast %cst_24 : f32 to vector<256x128xf32>
    %38 = arith.maximumf %36, %37 : vector<256x128xf32>
    %39 = arith.truncf %38 : vector<256x128xf32> to vector<256x128xbf16>
    %c0_25 = arith.constant 0 : index
    %c0_26 = arith.constant 0 : index
    %40 = vector.load %arg11[%c0_25, %c0_26] : memref<128x128xbf16, #tpu.memory_space<vmem>>, vector<128x128xbf16>
    %cst_27 = arith.constant dense<0.000000e+00> : vector<256x128xf32>
    %41 = tpu.matmul %39, %40, %cst_27 {dimension_numbers = #tpu.dot_dimension_numbers<[1], [0], [0], [1], [0, 0, 1, 1], [], []>} : vector<256x128xbf16>, vector<128x128xbf16>, vector<256x128xf32> -> vector<256x128xf32>
    %c0_28 = arith.constant 0 : index
    %c0_29 = arith.constant 0 : index
    %42 = vector.load %arg12[%c0_28, %c0_29] : memref<1x128xf32, #tpu.memory_space<vmem>>, vector<1x128xf32>
    %43 = vector.broadcast %42 : vector<1x128xf32> to vector<256x128xf32>
    %44 = arith.addf %41, %43 : vector<256x128xf32>
    %c0_30 = arith.constant 0 : index
    %c0_31 = arith.constant 0 : index
    %45 = vector.load %arg13[%c0_30, %c0_31] : memref<256x128xf32, #tpu.memory_space<vmem>>, vector<256x128xf32>
    tpu.vector_store %arg13[%c0_30, %c0_31], %44 {strides = array<i32>} : memref<256x128xf32, #tpu.memory_space<vmem>>, vector<256x128xf32>,
    %c0_32 = arith.constant 0 : index
    %c0_33 = arith.constant 0 : index
    %46 = vector.load %arg14[%c0_32, %c0_33] : memref<256x128xf32, #tpu.memory_space<vmem>>, vector<256x128xf32>
    tpu.vector_store %arg14[%c0_32, %c0_33], %19 {strides = array<i32>} : memref<256x128xf32, #tpu.memory_space<vmem>>, vector<256x128xf32>,
    return
  }
  func.func @transform_0(%arg0: i32) -> (i32, i32) {
    %c0_i32 = arith.constant 0 : i32
    %c0_i32_0 = arith.constant 0 : i32
    return %arg0, %c0_i32 : i32, i32
  }
  func.func @transform_1(%arg0: i32) -> (i32, i32) {
    %c0_i32 = arith.constant 0 : i32
    %c0_i32_0 = arith.constant 0 : i32
    return %arg0, %c0_i32 : i32, i32
  }
  func.func @transform_2(%arg0: i32) -> (i32, i32) {
    %c0_i32 = arith.constant 0 : i32
    %c0_i32_0 = arith.constant 0 : i32
    %c0_i32_1 = arith.constant 0 : i32
    return %c0_i32, %c0_i32_0 : i32, i32
  }
  func.func @transform_3(%arg0: i32) -> (i32, i32) {
    %c0_i32 = arith.constant 0 : i32
    %c0_i32_0 = arith.constant 0 : i32
    %c0_i32_1 = arith.constant 0 : i32
    return %c0_i32, %c0_i32_0 : i32, i32
  }
  func.func @transform_4(%arg0: i32) -> (i32, i32) {
    %c0_i32 = arith.constant 0 : i32
    %c0_i32_0 = arith.constant 0 : i32
    %c0_i32_1 = arith.constant 0 : i32
    return %c0_i32, %c0_i32_0 : i32, i32
  }
  func.func @transform_5(%arg0: i32) -> (i32, i32) {
    %c0_i32 = arith.constant 0 : i32
    %c0_i32_0 = arith.constant 0 : i32
    %c0_i32_1 = arith.constant 0 : i32
    return %c0_i32, %c0_i32_0 : i32, i32
  }
  func.func @transform_6(%arg0: i32) -> (i32, i32) {
    %c0_i32 = arith.constant 0 : i32
    %c0_i32_0 = arith.constant 0 : i32
    %c0_i32_1 = arith.constant 0 : i32
    return %c0_i32, %c0_i32_0 : i32, i32
  }
  func.func @transform_7(%arg0: i32) -> (i32, i32) {
    %c0_i32 = arith.constant 0 : i32
    %c0_i32_0 = arith.constant 0 : i32
    %c0_i32_1 = arith.constant 0 : i32
    return %c0_i32, %c0_i32_0 : i32, i32
  }
  func.func @transform_8(%arg0: i32) -> (i32, i32) {
    %c0_i32 = arith.constant 0 : i32
    %c0_i32_0 = arith.constant 0 : i32
    %c0_i32_1 = arith.constant 0 : i32
    return %c0_i32, %c0_i32_0 : i32, i32
  }
  func.func @transform_9(%arg0: i32) -> (i32, i32) {
    %c0_i32 = arith.constant 0 : i32
    %c0_i32_0 = arith.constant 0 : i32
    %c0_i32_1 = arith.constant 0 : i32
    return %c0_i32, %c0_i32_0 : i32, i32
  }
  func.func @transform_10(%arg0: i32) -> (i32, i32) {
    %c0_i32 = arith.constant 0 : i32
    %c0_i32_0 = arith.constant 0 : i32
    %c0_i32_1 = arith.constant 0 : i32
    return %c0_i32, %c0_i32_0 : i32, i32
  }
  func.func @transform_11(%arg0: i32) -> (i32, i32) {
    %c0_i32 = arith.constant 0 : i32
    %c0_i32_0 = arith.constant 0 : i32
    %c0_i32_1 = arith.constant 0 : i32
    return %c0_i32, %c0_i32_0 : i32, i32
  }
  func.func @transform_12(%arg0: i32) -> (i32, i32) {
    %c0_i32 = arith.constant 0 : i32
    %c0_i32_0 = arith.constant 0 : i32
    return %arg0, %c0_i32 : i32, i32
  }
  func.func @transform_13(%arg0: i32) -> (i32, i32) {
    %c0_i32 = arith.constant 0 : i32
    %c0_i32_0 = arith.constant 0 : i32
    return %arg0, %c0_i32 : i32, i32
  }
}

</mosaic_0001>

<bundles_post_ra>
// kernel: _lambda_.1
= control target key start
LH: loop header
LB: loop body
LE: loop exit
PB: predicated region body
PF: predicated region fallthrough
CT: control target
= control target key end

     0   :  { %s2581_s25 = smov 0   ;;  %s3253_s0 = inlined_call_operand.vmem [shape: bf16[512,128], index: 0, kind: input, shape index: {}]   ;;  %s3254_s1 = inlined_call_operand.vmem [shape: bf16[512,128], index: 1, kind: input, shape index: {}]   ;;  %s3255_s2 = inlined_call_operand.vmem [shape: bf16[128,128], index: 2, kind: input, shape index: {}]   ;;  %s3256_s3 = inlined_call_operand.vmem [shape: f32[1,128], index: 3, kind: input, shape index: {}]   ;;  %s3257_s4 = inlined_call_operand.vmem [shape: bf16[128,128], index: 4, kind: input, shape index: {}]   ;;  %s3258_s5 = inlined_call_operand.vmem [shape: f32[1,128], index: 5, kind: input, shape index: {}]   ;;  %s3259_s6 = inlined_call_operand.vmem [shape: bf16[128,128], index: 6, kind: input, shape index: {}]   ;;  %s3260_s7 = inlined_call_operand.vmem [shape: f32[1,128], index: 7, kind: input, shape index: {}]   ;;  %s3261_s8 = inlined_call_operand.vmem [shape: bf16[128,128], index: 8, kind: input, shape index: {}]   ;;  %s3262_s9 = inlined_call_operand.vmem [shape: f32[1,128], index: 9, kind: input, shape index: {}]   ;;  %s3263_s10 = inlined_call_operand.vmem [shape: bf16[128,128], index: 10, kind: input, shape index: {}]   ;;  %s3264_s11 = inlined_call_operand.vmem [shape: f32[1,128], index: 11, kind: input, shape index: {}]   ;;  %s3265_s12 = inlined_call_operand.vmem [shape: f32[512,128], index: 12, kind: output, shape index: {0}]   ;;  %s3266_s13 = inlined_call_operand.vmem [shape: f32[512,128], index: 13, kind: output, shape index: {1}]  }
   0x1 LB: > { %s1978_s26 = sadd.s32 4294967295, %s2508_s25   ;;  %p1982_p0 = scmp.ge.s32.totalorder %s2508_s25, 1  ;;  %s2508_s25 = sphi %s2581_s25, %s24_s25  }
   0x2   : > { %p402_p1 = scmp.lt.s32.totalorder %s2508_s25, 3 }
   0x4   : > { %p403_p2 = pnand %p1982_p0, %p402_p1 }
   0x5   : > { %s1983_s18 = sshll.u32 (!%p403_p2), %s1978_s26, 5  ;;  %s2510_s16 = smov (!%p403_p2), 64  }
   0x6   : > { %406 = sbr.rel (%p403_p2) target bundleno = 1116 (0x45c), region = 68  ;;  %p457_p3 = scmp.lt.s32.totalorder (!%p403_p2), %s1983_s18, 63 }
   0xb   : > { %v2288_v0 = vld [vmem:[%s3255_s2 + $0x38] sm:$0xff]  ;;  %v2287_v1 = vld [vmem:[%s3255_s2 + $0x30] sm:$0xff]  ;;  %v2286_v2 = vld [vmem:[%s3255_s2 + $0x28] sm:$0xff]  ;;  %s3270_s18 = smov (!%p457_p3, %s1983_s18), 63 }
   0xc   : > { %676 = vmatpush.bf16.msra.mxu0 %v2288_v0  ;;  %2400 = vmatpush.bf16.msra.mxu1 %v2288_v0  ;;  %v2285_v3 = vld [vmem:[%s3255_s2 + $0x20] sm:$0xff]  ;;  %v2284_v4 = vld [vmem:[%s3255_s2 + $0x18] sm:$0xff]  ;;  %v2283_v5 = vld [vmem:[%s3255_s2 + $0x10] sm:$0xff]  ;;  %s1984_s26 = sshll.u32 %s3270_s18, 2  ;;  %s1988_s27 = sshll.u32 %s3270_s18, 3 }
   0xd   : > { %2401 = vmatpush.bf16.msra.mxu2 %v2288_v0  ;;  %2402 = vmatpush.bf16.msra.mxu3 %v2288_v0  ;;  %v2282_v6 = vld [vmem:[%s3255_s2 + $0x8] sm:$0xff]  ;;  %v2281_v7 = vld [vmem:[%s3255_s2] sm:$0xff]  ;;  %s2621_s14 = scalar_lea.vmem %s3253_s0, %s1984_s26  ;;  %v2296_v11 = vld [vmem:[%s3257_s4 + $0x38] sm:$0xff]  ;;  %s2758_s15 = scalar_lea.vmem %s3266_s13, %s1988_s27 }
   0xe   : > { %v2265_v8 = vld [vmem:[%s2621_s14] sm:$0xff]  ;;  %v2266_v9 = vld [vmem:[%s2621_s14 + $0x8] sm:$0xff]  ;;  %v2295_v12 = vld [vmem:[%s3257_s4 + $0x30] sm:$0xff]  ;;  %s2915_s28 = scalar_lea.vmem %s3254_s1, %s1984_s26  ;;  %s3170_s22 = scalar_lea.vmem %s3265_s12, %s1988_s27 }
   0xf   : > { %v2269_v10 = vld [vmem:[%s2621_s14 + $0x20] sm:$0xff]  ;;  %v2294_v13 = vld [vmem:[%s3257_s4 + $0x28] sm:$0xff]  ;;  %v2267_v15 = vld [vmem:[%s2621_s14 + $0x10] sm:$0xff] }
  0x10   : > { %677 = vmatpush.bf16.msra.mxu0 %v2287_v1  ;;  %2403 = vmatpush.bf16.msra.mxu1 %v2287_v1  ;;  %v2293_v14 = vld [vmem:[%s3257_s4 + $0x20] sm:$0xff]  ;;  %v2270_v16 = vld [vmem:[%s2621_s14 + $0x28] sm:$0xff]  ;;  %v2292_v17 = vld [vmem:[%s3257_s4 + $0x18] sm:$0xff] }
  0x11   : > { %2404 = vmatpush.bf16.msra.mxu2 %v2287_v1  ;;  %2405 = vmatpush.bf16.msra.mxu3 %v2287_v1  ;;  %v2273_v18 = vld [vmem:[%s2621_s14 + $0x40] sm:$0xff]  ;;  %v2291_v19 = vld [vmem:[%s3257_s4 + $0x10] sm:$0xff]  ;;  %v2290_v20 = vld [vmem:[%s3257_s4 + $0x8] sm:$0xff] }
  0x12   : > { %v2268_v21 = vld [vmem:[%s2621_s14 + $0x18] sm:$0xff]  ;;  %v2271_v22 = vld [vmem:[%s2621_s14 + $0x30] sm:$0xff]  ;;  %v2274_v24 = vld [vmem:[%s2621_s14 + $0x48] sm:$0xff] }
  0x13   : > { %v2272_v23 = vld [vmem:[%s2621_s14 + $0x38] sm:$0xff]  ;;  %v2289_v25 = vld [vmem:[%s3257_s4] sm:$0xff]  ;;  %v2275_v26 = vld [vmem:[%s2621_s14 + $0x50] sm:$0xff] }
  0x14   : > { %678 = vmatpush.bf16.msra.mxu0 %v2286_v2  ;;  %2406 = vmatpush.bf16.msra.mxu1 %v2286_v2  ;;  %v2661_v28 = vld [vmem:[%s3256_s3] ss:$0 sm:$0xff]  ;;  %v2276_v29 = vld [vmem:[%s2621_s14 + $0x58] sm:$0xff]  ;;  %v2278_v45 = vld [vmem:[%s2621_s14 + $0x68] sm:$0xff] }
  0x15   : > { %2407 = vmatpush.bf16.msra.mxu2 %v2286_v2  ;;  %2408 = vmatpush.bf16.msra.mxu3 %v2286_v2  ;;  %v2277_v37 = vld [vmem:[%s2621_s14 + $0x60] sm:$0xff]  ;;  %v2304_v53 = vld [vmem:[%s3259_s6 + $0x38] sm:$0xff]  ;;  %v2279_v55 = vld [vmem:[%s2621_s14 + $0x70] sm:$0xff] }
  0x16   : > { %v2303_v63 = vld [vmem:[%s3259_s6 + $0x30] sm:$0xff]  ;;  %v2280_v1 = vld [vmem:[%s2621_s14 + $0x78] sm:$0xff]  ;;  %v2302_v2 = vld [vmem:[%s3259_s6 + $0x28] sm:$0xff] }
  0x18   : > { %679 = vmatpush.bf16.msra.mxu0 %v2285_v3  ;;  %2409 = vmatpush.bf16.msra.mxu1 %v2285_v3 }
  0x19   : > { %2410 = vmatpush.bf16.msra.mxu2 %v2285_v3  ;;  %2411 = vmatpush.bf16.msra.mxu3 %v2285_v3 }
  0x1c   : > { %680 = vmatpush.bf16.msra.mxu0 %v2284_v4  ;;  %2412 = vmatpush.bf16.msra.mxu1 %v2284_v4 }
  0x1d   : > { %2413 = vmatpush.bf16.msra.mxu2 %v2284_v4  ;;  %2414 = vmatpush.bf16.msra.mxu3 %v2284_v4 }
  0x20   : > { %681 = vmatpush.bf16.msra.mxu0 %v2283_v5  ;;  %2415 = vmatpush.bf16.msra.mxu1 %v2283_v5 }
  0x21   : > { %2416 = vmatpush.bf16.msra.mxu2 %v2283_v5  ;;  %2417 = vmatpush.bf16.msra.mxu3 %v2283_v5 }
  0x24   : > { %682 = vmatpush.bf16.msra.mxu0 %v2282_v6  ;;  %2418 = vmatpush.bf16.msra.mxu1 %v2282_v6 }
  0x25   : > { %2419 = vmatpush.bf16.msra.mxu2 %v2282_v6  ;;  %2420 = vmatpush.bf16.msra.mxu3 %v2282_v6 }
  0x28   : > { %683 = vmatpush.bf16.msra.mxu0 %v2281_v7  ;;  %2421 = vmatpush.bf16.msra.mxu1 %v2281_v7 }
  0x29   : > { %2422 = vmatpush.bf16.msra.mxu2 %v2281_v7  ;;  %2423 = vmatpush.bf16.msra.mxu3 %v2281_v7 }
  0x2b   : > { %684 = vmatmul.bf16.vlgmr.msra.gmra.mxu0 %v2265_v8  ;;  %704 = vmatmul.bf16.vlgmr.msra.gmra.mxu1 %v2269_v10  ;;  %v2300_v10 = vld [vmem:[%s3259_s6 + $0x18] sm:$0xff] }
  0x2c   : > { %881 = vmatpush.bf16.msrb.mxu1 %v2296_v11  ;;  %724 = vmatmul.bf16.vlgmr.msra.gmra.mxu2 %v2273_v18  ;;  %v2299_v18 = vld [vmem:[%s3259_s6 + $0x10] sm:$0xff] }
  0x2d   : > { %744 = vmatmul.bf16.vlgmr.msra.gmra.mxu3 %v2277_v37  ;;  %1054 = vmatpush.bf16.msrb.mxu2 %v2304_v53 }
  0x30   : > { %882 = vmatpush.bf16.msrb.mxu1 %v2295_v12 }
  0x31   : > { %1055 = vmatpush.bf16.msrb.mxu2 %v2303_v63 }
  0x34   : > { %883 = vmatpush.bf16.msrb.mxu1 %v2294_v13 }
  0x35   : > { %1056 = vmatpush.bf16.msrb.mxu2 %v2302_v2 }
  0x38   : > { %884 = vmatpush.bf16.msrb.mxu1 %v2293_v14 }
  0x3b   : > { %689 = vmatmul.bf16.gmra.mxu0 %v2266_v9  ;;  %709 = vmatmul.bf16.gmra.mxu1 %v2270_v16  ;;  %v2301_v9 = vld [vmem:[%s3259_s6 + $0x20] sm:$0xff] }
  0x3c   : > { %885 = vmatpush.bf16.msrb.mxu1 %v2292_v17  ;;  %729 = vmatmul.bf16.gmra.mxu2 %v2274_v24 }
  0x3d   : > { %749 = vmatmul.bf16.gmra.mxu3 %v2278_v45  ;;  %1057 = vmatpush.bf16.msrb.mxu2 %v2301_v9 }
  0x40   : > { %886 = vmatpush.bf16.msrb.mxu1 %v2291_v19  ;;  %v2298_v19 = vld [vmem:[%s3259_s6 + $0x8] sm:$0xff] }
  0x41   : > { %1058 = vmatpush.bf16.msrb.mxu2 %v2300_v10 }
  0x44   : > { %887 = vmatpush.bf16.msrb.mxu1 %v2290_v20 }
  0x45   : > { %1059 = vmatpush.bf16.msrb.mxu2 %v2299_v18 }
  0x48   : > { %888 = vmatpush.bf16.msrb.mxu1 %v2289_v25 }
  0x49   : > { %1060 = vmatpush.bf16.msrb.mxu2 %v2298_v19 }
  0x4b   : > { %694 = vmatmul.bf16.gmra.mxu0 %v2267_v15  ;;  %714 = vmatmul.bf16.gmra.mxu1 %v2271_v22 }
  0x4c   : > { %734 = vmatmul.bf16.gmra.mxu2 %v2275_v26 }
  0x4d   : > { %754 = vmatmul.bf16.gmra.mxu3 %v2279_v55 }
  0x5b   : > { %699 = vmatmul.bf16.gmra.mxu0 %v2268_v21  ;;  %719 = vmatmul.bf16.gmra.mxu1 %v2272_v23 }
  0x5c   : > { %739 = vmatmul.bf16.gmra.mxu2 %v2276_v29 }
  0x5d   : > { %759 = vmatmul.bf16.gmra.mxu3 %v2280_v1 }
  0xa8   : > { %v685_v27 = vpop.f32.mrf.mxu0  ;;  %v705_v51 = vpop.f32.mrf.mxu1 }
  0xa9   : > { %v686_v30 = vadd.f32 %v2661_v28, %v685_v27  ;;  %v706_v3 = vadd.f32 %v2661_v28, %v705_v51  ;;  %v2297_v27 = vld [vmem:[%s3259_s6] sm:$0xff] }
  0xaa   : > { %1061 = vmatpush.bf16.msrb.mxu2 %v2297_v27 }
  0xab   : > { %v765_v33 = vmax.f32 %v686_v30, 0.0  ;;  %v773_v5 = vmax.f32 %v706_v3, 0.0 }
  0xaf   : > { %v725_v25 = vpop.f32.mrf.mxu2 }
  0xb0   : > { %v687_v31 = vpop.f32.mrf.mxu0  ;;  %v707_v56 = vpop.f32.mrf.mxu1  ;;  %v726_v37 = vadd.f32 %v2661_v28, %v725_v25 }
  0xb1   : > { %v688_v32 = vadd.f32 %v2661_v28, %v687_v31  ;;  %v708_v4 = vadd.f32 %v2661_v28, %v707_v56  ;;  %v745_v3 = vpop.f32.mrf.mxu3 }
  0xb2   : > { %v746_v19 = vadd.f32 %v2661_v28, %v745_v3 }
  0xb3   : > { %v766_v34 = vmax.f32 %v688_v32, 0.0  ;;  %v774_v6 = vmax.f32 %v708_v4, 0.0 }
  0xb5   : > { %v797_v35 = vpack.c.bf16 %v766_v34, %v765_v33  ;;  %v801_v8 = vpack.c.bf16 %v774_v6, %v773_v5 }
  0xb7   : > { %889 = vmatmul.bf16.vlgmr.msrb.gmra.mxu1 %v797_v35  ;;  %v727_v32 = vpop.f32.mrf.mxu2 }
  0xb8   : > { %v690_v36 = vpop.f32.mrf.mxu0  ;;  %v710_v0 = vpop.f32.mrf.mxu1 }
  0xb9   : > { %v691_v38 = vadd.f32 %v2661_v28, %v690_v36  ;;  %v711_v12 = vadd.f32 %v2661_v28, %v710_v0 }
  0xbb   : > { %v767_v41 = vmax.f32 %v691_v38, 0.0  ;;  %v775_v14 = vmax.f32 %v711_v12, 0.0  ;;  %v728_v38 = vadd.f32 %v2661_v28, %v727_v32 }
  0xbf   : > { %v730_v36 = vpop.f32.mrf.mxu2 }
  0xc0   : > { %v692_v39 = vpop.f32.mrf.mxu0  ;;  %v712_v7 = vpop.f32.mrf.mxu1 }
  0xc1   : > { %v693_v40 = vadd.f32 %v2661_v28, %v692_v39  ;;  %v713_v13 = vadd.f32 %v2661_v28, %v712_v7  ;;  %v781_v39 = vmax.f32 %v726_v37, 0.0 }
  0xc3   : > { %v768_v42 = vmax.f32 %v693_v40, 0.0  ;;  %v776_v15 = vmax.f32 %v713_v13, 0.0  ;;  %v782_v40 = vmax.f32 %v728_v38, 0.0 }
  0xc5   : > { %v798_v43 = vpack.c.bf16 %v768_v42, %v767_v41  ;;  %v802_v16 = vpack.c.bf16 %v776_v15, %v775_v14 }
  0xc7   : > { %894 = vmatmul.bf16.gmra.mxu1 %v798_v43  ;;  %v732_v41 = vpop.f32.mrf.mxu2  ;;  %v805_v43 = vpack.c.bf16 %v782_v40, %v781_v39 }
  0xc8   : > { %v695_v44 = vpop.f32.mrf.mxu0  ;;  %v715_v11 = vpop.f32.mrf.mxu1 }
  0xc9   : > { %v696_v46 = vadd.f32 %v2661_v28, %v695_v44  ;;  %v716_v20 = vadd.f32 %v2661_v28, %v715_v11  ;;  %v2713_v44 = vld [vmem:[%s3258_s5] ss:$0 sm:$0xff]  ;;  %v747_v11 = vpop.f32.mrf.mxu3 }
  0xcb   : > { %v769_v49 = vmax.f32 %v696_v46, 0.0  ;;  %v777_v23 = vmax.f32 %v716_v20, 0.0 }
  0xcf   : > { %v735_v46 = vpop.f32.mrf.mxu2 }
  0xd0   : > { %v697_v47 = vpop.f32.mrf.mxu0  ;;  %v717_v17 = vpop.f32.mrf.mxu1 }
  0xd1   : > { %v698_v48 = vadd.f32 %v2661_v28, %v697_v47  ;;  %v718_v21 = vadd.f32 %v2661_v28, %v717_v17  ;;  %v731_v47 = vadd.f32 %v2661_v28, %v730_v36  ;;  %v750_v17 = vpop.f32.mrf.mxu3 }
  0xd2   : > { %v751_v32 = vadd.f32 %v2661_v28, %v750_v17 }
  0xd3   : > { %v770_v50 = vmax.f32 %v698_v48, 0.0  ;;  %v778_v24 = vmax.f32 %v718_v21, 0.0  ;;  %v748_v21 = vadd.f32 %v2661_v28, %v747_v11 }
  0xd4   : > { %v791_v37 = vmax.f32 %v751_v32, 0.0 }
  0xd5   : > { %v799_v52 = vpack.c.bf16 %v770_v50, %v769_v49  ;;  %v803_v26 = vpack.c.bf16 %v778_v24, %v777_v23  ;;  %v733_v49 = vadd.f32 %v2661_v28, %v732_v41  ;;  %v789_v24 = vmax.f32 %v746_v19, 0.0 }
  0xd6   : > { %v790_v25 = vmax.f32 %v748_v21, 0.0 }
  0xd7   : > { %899 = vmatmul.bf16.gmra.mxu1 %v799_v52  ;;  %v783_v52 = vmax.f32 %v731_v47, 0.0  ;;  %v784_v53 = vmax.f32 %v733_v49, 0.0  ;;  %v737_v56 = vpop.f32.mrf.mxu2 }
  0xd8   : > { %v700_v54 = vpop.f32.mrf.mxu0  ;;  %v720_v22 = vpop.f32.mrf.mxu1 }
  0xd9   : > { %v701_v57 = vadd.f32 %v2661_v28, %v700_v54  ;;  %v721_v30 = vadd.f32 %v2661_v28, %v720_v22  ;;  %v806_v55 = vpack.c.bf16 %v784_v53, %v783_v52 }
  0xdb   : > { %v771_v60 = vmax.f32 %v701_v57, 0.0  ;;  %v779_v33 = vmax.f32 %v721_v30, 0.0 }
  0xdf   : > { %v740_v63 = vpop.f32.mrf.mxu2 }
  0xe0   : > { %v702_v58 = vpop.f32.mrf.mxu0  ;;  %v722_v29 = vpop.f32.mrf.mxu1  ;;  %v741_v7 = vadd.f32 %v2661_v28, %v740_v63 }
  0xe1   : > { %v703_v59 = vadd.f32 %v2661_v28, %v702_v58  ;;  %v723_v31 = vadd.f32 %v2661_v28, %v722_v29  ;;  %v736_v58 = vadd.f32 %v2661_v28, %v735_v46  ;;  %v809_v29 = vpack.c.bf16 %v790_v25, %v789_v24 }
  0xe2   : > { %v787_v13 = vmax.f32 %v741_v7, 0.0 }
  0xe3   : > { %v772_v61 = vmax.f32 %v703_v59, 0.0  ;;  %v780_v34 = vmax.f32 %v723_v31, 0.0  ;;  %v785_v0 = vmax.f32 %v736_v58, 0.0 }
  0xe5   : > { %v800_v62 = vpack.c.bf16 %v772_v61, %v771_v60  ;;  %v804_v35 = vpack.c.bf16 %v780_v34, %v779_v33  ;;  %v738_v60 = vadd.f32 %v2661_v28, %v737_v56 }
  0xe7   : > { %904 = vmatmul.bf16.gmra.mxu1 %v800_v62  ;;  %v786_v1 = vmax.f32 %v738_v60, 0.0  ;;  %v742_v5 = vpop.f32.mrf.mxu2 }
  0xe8   : > { %v743_v9 = vadd.f32 %v2661_v28, %v742_v5 }
  0xe9   : > { %v807_v4 = vpack.c.bf16 %v786_v1, %v785_v0 }
  0xea   : > { %v788_v14 = vmax.f32 %v743_v9, 0.0  ;;  %v2751_v9 = vld [vmem:[%s3260_s7] ss:$0 sm:$0xff] }
  0xf7   : > { %909 = vmatmul.bf16.gmra.mxu1 %v801_v8 }
 0x107   : > { %914 = vmatmul.bf16.gmra.mxu1 %v802_v16  ;;  %v808_v16 = vpack.c.bf16 %v788_v14, %v787_v13 }
 0x117   : > { %919 = vmatmul.bf16.gmra.mxu1 %v803_v26  ;;  %v752_v26 = vpop.f32.mrf.mxu3 }
 0x118   : > { %v753_v34 = vadd.f32 %v2661_v28, %v752_v26 }
 0x11a   : > { %v792_v38 = vmax.f32 %v753_v34, 0.0 }
 0x11c   : > { %v810_v40 = vpack.c.bf16 %v792_v38, %v791_v37  ;;  %v2312_v38 = vld [vmem:[%s3261_s8 + $0x38] sm:$0xff] }
 0x11d   : > { %1518 = vmatpush.bf16.msrb.mxu3 %v2312_v38 }
 0x11f   : > { %v755_v31 = vpop.f32.mrf.mxu3 }
 0x127   : > { %924 = vmatmul.bf16.gmra.mxu1 %v804_v35  ;;  %v757_v41 = vpop.f32.mrf.mxu3 }
 0x128   : > { %v758_v46 = vadd.f32 %v2661_v28, %v757_v41 }
 0x12f   : > { %v760_v49 = vpop.f32.mrf.mxu3 }
 0x130   : > { %v761_v56 = vadd.f32 %v2661_v28, %v760_v49 }
 0x134   : > { %v890_v42 = vpop.f32.mrf.mxu1 }
 0x135   : > { %v891_v48 = vadd.f32 %v2713_v44, %v890_v42 }
 0x137   : > { %929 = vmatmul.bf16.gmra.mxu1 %v805_v43  ;;  %v756_v43 = vadd.f32 %v2661_v28, %v755_v31 }
 0x13c   : > { %v892_v45 = vpop.f32.mrf.mxu1 }
 0x13d   : > { %v893_v50 = vadd.f32 %v2713_v44, %v892_v45 }
 0x13f   : > { %v970_v51 = vpack.c.bf16 %v893_v50, %v891_v48  ;;  %v793_v50 = vmax.f32 %v756_v43, 0.0 }
 0x141   : > { %1062 = vmatmul.bf16.vlgmr.msrb.gmra.mxu2 %v970_v51  ;;  %v794_v51 = vmax.f32 %v758_v46, 0.0 }
 0x143   : > { %v811_v53 = vpack.c.bf16 %v794_v51, %v793_v50  ;;  %v2310_v50 = vld [vmem:[%s3261_s8 + $0x28] sm:$0xff] }
 0x144   : > { %v895_v54 = vpop.f32.mrf.mxu1 }
 0x145   : > { %v896_v59 = vadd.f32 %v2713_v44, %v895_v54  ;;  %v762_v54 = vpop.f32.mrf.mxu3 }
 0x146   : > { %v763_v58 = vadd.f32 %v2661_v28, %v762_v54  ;;  %v2309_v54 = vld [vmem:[%s3261_s8 + $0x20] sm:$0xff] }
 0x147   : > { %934 = vmatmul.bf16.gmra.mxu1 %v806_v55 }
 0x14c   : > { %v897_v57 = vpop.f32.mrf.mxu1 }
 0x14d   : > { %v898_v61 = vadd.f32 %v2713_v44, %v897_v57 }
 0x14f   : > { %v971_v62 = vpack.c.bf16 %v898_v61, %v896_v59  ;;  %v795_v61 = vmax.f32 %v761_v56, 0.0 }
 0x151   : > { %1067 = vmatmul.bf16.gmra.mxu2 %v971_v62  ;;  %v796_v62 = vmax.f32 %v763_v58, 0.0 }
 0x153   : > { %v812_v0 = vpack.c.bf16 %v796_v62, %v795_v61  ;;  %v2308_v61 = vld [vmem:[%s3261_s8 + $0x18] sm:$0xff] }
 0x154   : > { %v900_v2 = vpop.f32.mrf.mxu1 }
 0x155   : > { %v901_v8 = vadd.f32 %v2713_v44, %v900_v2 }
 0x157   : > { %939 = vmatmul.bf16.gmra.mxu1 %v807_v4 }
 0x15c   : > { %v902_v6 = vpop.f32.mrf.mxu1 }
 0x15d   : > { %v903_v10 = vadd.f32 %v2713_v44, %v902_v6 }
 0x15f   : > { %v972_v12 = vpack.c.bf16 %v903_v10, %v901_v8 }
 0x161   : > { %1072 = vmatmul.bf16.gmra.mxu2 %v972_v12 }
 0x164   : > { %v905_v15 = vpop.f32.mrf.mxu1 }
 0x165   : > { %v906_v20 = vadd.f32 %v2713_v44, %v905_v15 }
 0x167   : > { %944 = vmatmul.bf16.gmra.mxu1 %v808_v16 }
 0x16c   : > { %v907_v18 = vpop.f32.mrf.mxu1 }
 0x16d   : > { %v908_v22 = vadd.f32 %v2713_v44, %v907_v18 }
 0x16f   : > { %v973_v23 = vpack.c.bf16 %v908_v22, %v906_v20 }
 0x171   : > { %1077 = vmatmul.bf16.gmra.mxu2 %v973_v23 }
 0x174   : > { %v910_v27 = vpop.f32.mrf.mxu1 }
 0x175   : > { %v911_v33 = vadd.f32 %v2713_v44, %v910_v27 }
 0x177   : > { %949 = vmatmul.bf16.gmra.mxu1 %v809_v29 }
 0x17c   : > { %v912_v30 = vpop.f32.mrf.mxu1 }
 0x17d   : > { %v913_v35 = vadd.f32 %v2713_v44, %v912_v30 }
 0x17f   : > { %v974_v36 = vpack.c.bf16 %v913_v35, %v911_v33 }
 0x181   : > { %1082 = vmatmul.bf16.gmra.mxu2 %v974_v36 }
 0x184   : > { %v915_v39 = vpop.f32.mrf.mxu1 }
 0x185   : > { %v916_v45 = vadd.f32 %v2713_v44, %v915_v39 }
 0x187   : > { %954 = vmatmul.bf16.gmra.mxu1 %v810_v40 }
 0x18c   : > { %v917_v42 = vpop.f32.mrf.mxu1 }
 0x18d   : > { %v918_v47 = vadd.f32 %v2713_v44, %v917_v42  ;;  %v2311_v42 = vld [vmem:[%s3261_s8 + $0x30] sm:$0xff] }
 0x18e   : > { %1519 = vmatpush.bf16.msrb.mxu3 %v2311_v42 }
 0x18f   : > { %v975_v48 = vpack.c.bf16 %v918_v47, %v916_v45 }
 0x191   : > { %1087 = vmatmul.bf16.gmra.mxu2 %v975_v48 }
 0x192   : > { %1520 = vmatpush.bf16.msrb.mxu3 %v2310_v50 }
 0x194   : > { %v920_v52 = vpop.f32.mrf.mxu1 }
 0x195   : > { %v921_v57 = vadd.f32 %v2713_v44, %v920_v52 }
 0x196   : > { %1521 = vmatpush.bf16.msrb.mxu3 %v2309_v54 }
 0x197   : > { %959 = vmatmul.bf16.gmra.mxu1 %v811_v53 }
 0x19a   : > { %1522 = vmatpush.bf16.msrb.mxu3 %v2308_v61 }
 0x19c   : > { %v922_v55 = vpop.f32.mrf.mxu1 }
 0x19d   : > { %v923_v59 = vadd.f32 %v2713_v44, %v922_v55 }
 0x19f   : > { %v976_v60 = vpack.c.bf16 %v923_v59, %v921_v57 }
 0x1a1   : > { %1092 = vmatmul.bf16.gmra.mxu2 %v976_v60 }
 0x1a4   : > { %v925_v63 = vpop.f32.mrf.mxu1 }
 0x1a5   : > { %v926_v2 = vadd.f32 %v2713_v44, %v925_v63 }
 0x1a7   : > { %964 = vmatmul.bf16.gmra.mxu1 %v812_v0 }
 0x1ac   : > { %v927_v1 = vpop.f32.mrf.mxu1 }
 0x1ad   : > { %v928_v3 = vadd.f32 %v2713_v44, %v927_v1  ;;  %v2307_v1 = vld [vmem:[%s3261_s8 + $0x10] sm:$0xff] }
 0x1ae   : > { %1523 = vmatpush.bf16.msrb.mxu3 %v2307_v1 }
 0x1af   : > { %v977_v4 = vpack.c.bf16 %v928_v3, %v926_v2 }
 0x1b1   : > { %1097 = vmatmul.bf16.gmra.mxu2 %v977_v4 }
 0x1b4   : > { %v930_v5 = vpop.f32.mrf.mxu1 }
 0x1b5   : > { %v931_v6 = vadd.f32 %v2713_v44, %v930_v5 }
 0x1bc   : > { %v932_v28 = vpop.f32.mrf.mxu1 }
 0x1bd   : > { %v933_v7 = vadd.f32 %v2713_v44, %v932_v28 }
 0x1bf   : > { %v978_v8 = vpack.c.bf16 %v933_v7, %v931_v6  ;;  %v2306_v7 = vld [vmem:[%s3261_s8 + $0x8] sm:$0xff] }
 0x1c0   : > { %1524 = vmatpush.bf16.msrb.mxu3 %v2306_v7 }
 0x1c1   : > { %1102 = vmatmul.bf16.gmra.mxu2 %v978_v8 }
 0x1c4   : > { %v935_v10 = vpop.f32.mrf.mxu1  ;;  %v1063_v11 = vpop.f32.mrf.mxu2 }
 0x1c5   : > { %v2761_v12 = vadd.f32 %v2751_v9, %v1063_v11  ;;  %v936_v15 = vadd.f32 %v2713_v44, %v935_v10 }
 0x1c7   : > { %1844 = vst [vmem:[%s2758_s15] sm:$0xff] %v2761_v12  ;;  %1143 = vrot.lane.b32.xlu0 %v2761_v12, %s2510_s16 }
 0x1cc   : > { %v937_v13 = vpop.f32.mrf.mxu1  ;;  %v1065_v14 = vpop.f32.mrf.mxu2 }
 0x1cd   : > { %v938_v16 = vadd.f32 %v2713_v44, %v937_v13  ;;  %v2770_v17 = vadd.f32 %v2751_v9, %v1065_v14 }
 0x1cf   : > { %v979_v18 = vpack.c.bf16 %v938_v16, %v936_v15  ;;  %1845 = vst [vmem:[%s2758_s15 + $0x8] sm:$0xff] %v2770_v17  ;;  %1145 = vrot.lane.b32.xlu0 %v2770_v17, %s2510_s16  ;;  %v2305_v15 = vld [vmem:[%s3261_s8] sm:$0xff] }
 0x1d0   : > { %1525 = vmatpush.bf16.msrb.mxu3 %v2305_v15  ;;  %v2386_v15 = vld [vmem:[%s2915_s28 + $0x10] sm:$0xff]  }
 0x1d1   : > { %1107 = vmatmul.bf16.gmra.mxu2 %v979_v18 }
 0x1d4   : > { %v940_v19 = vpop.f32.mrf.mxu1  ;;  %v1068_v20 = vpop.f32.mrf.mxu2 }
 0x1d5   : > { %v2777_v21 = vadd.f32 %v2751_v9, %v1068_v20  ;;  %v941_v24 = vadd.f32 %v2713_v44, %v940_v19 }
 0x1d7   : > { %1846 = vst [vmem:[%s2758_s15 + $0x10] sm:$0xff] %v2777_v21  ;;  %1147 = vrot.lane.b32.xlu1 %v2777_v21, %s2510_s16 }
 0x1dc   : > { %v942_v22 = vpop.f32.mrf.mxu1  ;;  %v1070_v23 = vpop.f32.mrf.mxu2 }
 0x1dd   : > { %v943_v25 = vadd.f32 %v2713_v44, %v942_v22  ;;  %v2786_v26 = vadd.f32 %v2751_v9, %v1070_v23 }
 0x1df   : > { %v980_v27 = vpack.c.bf16 %v943_v25, %v941_v24  ;;  %1847 = vst [vmem:[%s2758_s15 + $0x18] sm:$0xff] %v2786_v26  ;;  %1149 = vrot.lane.b32.xlu1 %v2786_v26, %s2510_s16 }
 0x1e1   : > { %1112 = vmatmul.bf16.gmra.mxu2 %v980_v27 }
 0x1e4   : > { %v945_v29 = vpop.f32.mrf.mxu1  ;;  %v1073_v30 = vpop.f32.mrf.mxu2 }
 0x1e5   : > { %v2793_v31 = vadd.f32 %v2751_v9, %v1073_v30  ;;  %v946_v34 = vadd.f32 %v2713_v44, %v945_v29 }
 0x1e7   : > { %1848 = vst [vmem:[%s2758_s15 + $0x20] sm:$0xff] %v2793_v31  ;;  %1151 = vrot.lane.b32.xlu2 %v2793_v31, %s2510_s16 }
 0x1ec   : > { %v947_v32 = vpop.f32.mrf.mxu1  ;;  %v1075_v33 = vpop.f32.mrf.mxu2 }
 0x1ed   : > { %v948_v35 = vadd.f32 %v2713_v44, %v947_v32  ;;  %v2802_v36 = vadd.f32 %v2751_v9, %v1075_v33  ;;  %v2322_v32 = vld [vmem:[%s2915_s28] sm:$0xff]  }
 0x1ef   : > { %v981_v37 = vpack.c.bf16 %v948_v35, %v946_v34  ;;  %1849 = vst [vmem:[%s2758_s15 + $0x28] sm:$0xff] %v2802_v36  ;;  %1153 = vrot.lane.b32.xlu2 %v2802_v36, %s2510_s16  ;;  %v1399_v34 = vlaneseq }
 0x1f1   : > { %1117 = vmatmul.bf16.gmra.mxu2 %v981_v37  ;;  %v2323_v37 = vunpack.c.l.bf16 %v2322_v32 }
 0x1f4   : > { %v950_v39 = vpop.f32.mrf.mxu1  ;;  %v1078_v40 = vpop.f32.mrf.mxu2 }
 0x1f5   : > { %v2812_v41 = vadd.f32 %v2751_v9, %v1078_v40  ;;  %v951_v46 = vadd.f32 %v2713_v44, %v950_v39  ;;  %v2324_v39 = vunpack.c.h.bf16 %v2322_v32  ;;  %v1400_v40 = vand.u32 127, %v1399_v34 }
 0x1f7   : > { %1850 = vst [vmem:[%s2758_s15 + $0x30] sm:$0xff] %v2812_v41  ;;  %1155 = vrot.lane.b32.xlu0 %v2812_v41, %s2510_s16  ;;  %vm1401_vm0 = vcmp.lt.s32.totalorder %v1400_v40, 16  ;;  %v2387_v40 = vld [vmem:[%s2915_s28 + $0x18] sm:$0xff]  }
 0x1f8   : > { %vm2934_vm1 = vmpackc.low %vm1401_vm0, %vm1401_vm0 }
 0x1fc   : > { %v952_v43 = vpop.f32.mrf.mxu1  ;;  %v1080_v45 = vpop.f32.mrf.mxu2 }
 0x1fd   : > { %v953_v47 = vadd.f32 %v2713_v44, %v952_v43  ;;  %v2824_v48 = vadd.f32 %v2751_v9, %v1080_v45 }
 0x1ff   : > { %v982_v49 = vpack.c.bf16 %v953_v47, %v951_v46  ;;  %1851 = vst [vmem:[%s2758_s15 + $0x38] sm:$0xff] %v2824_v48  ;;  %1157 = vrot.lane.b32.xlu1 %v2824_v48, %s2510_s16 }
 0x201   : > { %1122 = vmatmul.bf16.gmra.mxu2 %v982_v49 }
 0x204   : > { %v955_v51 = vpop.f32.mrf.mxu1  ;;  %v1083_v52 = vpop.f32.mrf.mxu2 }
 0x205   : > { %v2834_v53 = vadd.f32 %v2751_v9, %v1083_v52  ;;  %v956_v57 = vadd.f32 %v2713_v44, %v955_v51 }
 0x207   : > { %1852 = vst [vmem:[%s2758_s15 + $0x40] sm:$0xff] %v2834_v53  ;;  %1159 = vrot.lane.b32.xlu2 %v2834_v53, %s2510_s16 }
 0x20c   : > { %v957_v55 = vpop.f32.mrf.mxu1  ;;  %v1085_v56 = vpop.f32.mrf.mxu2 }
 0x20d   : > { %v958_v58 = vadd.f32 %v2713_v44, %v957_v55  ;;  %v2846_v59 = vadd.f32 %v2751_v9, %v1085_v56 }
 0x20f   : > { %v983_v60 = vpack.c.bf16 %v958_v58, %v956_v57  ;;  %1853 = vst [vmem:[%s2758_s15 + $0x48] sm:$0xff] %v2846_v59  ;;  %1161 = vrot.lane.b32.xlu0 %v2846_v59, %s2510_s16 }
 0x211   : > { %1127 = vmatmul.bf16.gmra.mxu2 %v983_v60 }
 0x214   : > { %v960_v62 = vpop.f32.mrf.mxu1  ;;  %v1088_v63 = vpop.f32.mrf.mxu2 }
 0x215   : > { %v2856_v0 = vadd.f32 %v2751_v9, %v1088_v63  ;;  %v961_v4 = vadd.f32 %v2713_v44, %v960_v62 }
 0x217   : > { %1854 = vst [vmem:[%s2758_s15 + $0x50] sm:$0xff] %v2856_v0  ;;  %1163 = vrot.lane.b32.xlu1 %v2856_v0, %s2510_s16 }
 0x21c   : > { %v962_v2 = vpop.f32.mrf.mxu1  ;;  %v1090_v3 = vpop.f32.mrf.mxu2 }
 0x21d   : > { %v963_v5 = vadd.f32 %v2713_v44, %v962_v2  ;;  %v2868_v28 = vadd.f32 %v2751_v9, %v1090_v3 }
 0x21f   : > { %v984_v6 = vpack.c.bf16 %v963_v5, %v961_v4  ;;  %1855 = vst [vmem:[%s2758_s15 + $0x58] sm:$0xff] %v2868_v28  ;;  %1165 = vrot.lane.b32.xlu2 %v2868_v28, %s2510_s16 }
 0x221   : > { %1132 = vmatmul.bf16.gmra.mxu2 %v984_v6 }
 0x224   : > { %v965_v8 = vpop.f32.mrf.mxu1  ;;  %v1093_v10 = vpop.f32.mrf.mxu2 }
 0x225   : > { %v2878_v11 = vadd.f32 %v2751_v9, %v1093_v10  ;;  %v966_v16 = vadd.f32 %v2713_v44, %v965_v8 }
 0x227   : > { %1856 = vst [vmem:[%s2758_s15 + $0x60] sm:$0xff] %v2878_v11  ;;  %1167 = vrot.lane.b32.xlu0 %v2878_v11, %s2510_s16 }
 0x22c   : > { %v967_v13 = vpop.f32.mrf.mxu1  ;;  %v1095_v14 = vpop.f32.mrf.mxu2 }
 0x22d   : > { %v968_v18 = vadd.f32 %v2713_v44, %v967_v13  ;;  %v2890_v19 = vadd.f32 %v2751_v9, %v1095_v14 }
 0x22f   : > { %v985_v20 = vpack.c.bf16 %v968_v18, %v966_v16  ;;  %1857 = vst [vmem:[%s2758_s15 + $0x68] sm:$0xff] %v2890_v19  ;;  %1169 = vrot.lane.b32.xlu1 %v2890_v19, %s2510_s16  ;;  %v2332_v18 = vunpack.c.h.bf16 %v2386_v15 }
 0x231   : > { %1137 = vmatmul.bf16.gmra.mxu2 %v985_v20 }
 0x234   : > { %v1098_v22 = vpop.f32.mrf.mxu2 }
 0x235   : > { %v2897_v23 = vadd.f32 %v2751_v9, %v1098_v22 }
 0x237   : > { %1858 = vst [vmem:[%s2758_s15 + $0x70] sm:$0xff] %v2897_v23  ;;  %1171 = vrot.lane.b32.xlu2 %v2897_v23, %s2510_s16 }
 0x239   : > { %v1144_v44 = vpop.permute.xlu0 %1143 }
 0x23a   : > { %v1207_v25 = vmul.f32 1.442695, %v1144_v44 }
 0x23c   : > { %v1100_v24 = vpop.f32.mrf.mxu2  ;;  %2438 = vpow2.f32 %v1207_v25 }
 0x23d   : > { %v2904_v27 = vadd.f32 %v2751_v9, %v1100_v24 }
 0x23f   : > { %1859 = vst [vmem:[%s2758_s15 + $0x78] sm:$0xff] %v2904_v27  ;;  %1173 = vrot.lane.b32.xlu0 %v2904_v27, %s2510_s16 }
 0x241   : > { %v1146_v29 = vpop.permute.xlu0 %1145  ;;  %v1152_v51 = vpop.permute.xlu2 %1151 }
 0x242   : > { %v1209_v30 = vmul.f32 1.442695, %v1146_v29  ;;  %v2439_v38 = vpop.eup %2438  ;;  %v1215_v7 = vmul.f32 1.442695, %v1152_v51 }
 0x243   : > { %v1335_v43 = vmul.f32 %v2439_v38, %v2323_v37 }
 0x244   : > { %v1103_v33 = vpop.f32.mrf.mxu2  ;;  %2440 = vpow2.f32 %v1209_v30 }
 0x245   : > { %v2919_v35 = vadd.f32 %v2751_v9, %v1103_v33  ;;  %v1367_v52 = vadd.f32 %v1335_v43, %v2761_v12  ;;  %v2385_v12 = vld [vmem:[%s2915_s28 + $0x8] sm:$0xff]  }
 0x246   : > { %v2327_v61 = vunpack.c.l.bf16 %v2385_v12  ;;  %v2328_v63 = vunpack.c.h.bf16 %v2385_v12 }
 0x247   : > { %1860 = vst [vmem:[%s2758_s15 + $0x80] sm:$0xff] %v2919_v35  ;;  %1175 = vrot.lane.b32.xlu1 %v2919_v35, %s2510_s16 }
 0x249   : > { %v1148_v42 = vpop.permute.xlu1 %1147  ;;  %v1154_v1 = vpop.permute.xlu2 %1153 }
 0x24a   : > { %v2441_v45 = vpop.eup %2440  ;;  %v1211_v47 = vmul.f32 1.442695, %v1148_v42  ;;  %v1217_v4 = vmul.f32 1.442695, %v1154_v1 }
 0x24b   : > { %v1336_v46 = vmul.f32 %v2441_v45, %v2324_v39  ;;  %v2336_v45 = vunpack.c.h.bf16 %v2387_v40 }
 0x24c   : > { %v1105_v49 = vpop.f32.mrf.mxu2  ;;  %2442 = vpow2.f32 %v1211_v47 }
 0x24d   : > { %v2926_v50 = vadd.f32 %v2751_v9, %v1105_v49  ;;  %v1368_v54 = vadd.f32 %v1336_v46, %v2770_v17 }
 0x24f   : > { %1861 = vst [vmem:[%s2758_s15 + $0x88] sm:$0xff] %v2926_v50  ;;  %1177 = vrot.lane.b32.xlu2 %v2926_v50, %s2510_s16  ;;  %v2184_v56 = vpack.c.bf16 %v1368_v54, %v1367_v52 }
 0x251   : > { %v1150_v57 = vpop.permute.xlu1 %1149  ;;  %2185 = vmatmul.msk.bf16.vlgmr.msrb.gmra.mxu3 %vm2934_vm1, %v2184_v56 }
 0x252   : > { %v1213_v58 = vmul.f32 1.442695, %v1150_v57  ;;  %v2443_v62 = vpop.eup %2442 }
 0x253   : > { %v1337_v2 = vmul.f32 %v2443_v62, %v2327_v61  ;;  %v2388_v62 = vld [vmem:[%s2915_s28 + $0x20] sm:$0xff]  }
 0x254   : > { %2444 = vpow2.f32 %v1213_v58  ;;  %v1108_v60 = vpop.f32.mrf.mxu2  ;;  %v2339_v1 = vunpack.c.l.bf16 %v2388_v62 }
 0x255   : > { %v2942_v17 = vadd.f32 %v2751_v9, %v1108_v60  ;;  %v1369_v10 = vadd.f32 %v1337_v2, %v2777_v21  ;;  %2446 = vpow2.f32 %v1217_v4 }
 0x256   : > { %2448 = vpow2.f32 %v1215_v7 }
 0x257   : > { %1862 = vst [vmem:[%s2758_s15 + $0x90] sm:$0xff] %v2942_v17  ;;  %1179 = vrot.lane.b32.xlu0 %v2942_v17, %s2510_s16 }
 0x25a   : > { %v2445_v3 = vpop.eup %2444 }
 0x25b   : > { %v1338_v5 = vmul.f32 %v2445_v3, %v2328_v63  ;;  %v2447_v20 = vpop.eup %2446  ;;  %v2340_v3 = vunpack.c.h.bf16 %v2388_v62  ;;  %v2316_v62 = vld [vmem:[%s3263_s10 + $0x18] sm:$0xff] }
 0x25c   : > { %v1110_v6 = vpop.f32.mrf.mxu2  ;;  %v2449_v22 = vpop.eup %2448  ;;  %v1340_v44 = vmul.f32 %v2447_v20, %v2332_v18 }
 0x25d   : > { %v2949_v8 = vadd.f32 %v2751_v9, %v1110_v6  ;;  %v1370_v13 = vadd.f32 %v1338_v5, %v2786_v26  ;;  %v2331_v26 = vunpack.c.l.bf16 %v2386_v15 }
 0x25e   : > { %v1372_v32 = vadd.f32 %v1340_v44, %v2802_v36  ;;  %v2319_v44 = vld [vmem:[%s3263_s10 + $0x30] sm:$0xff] }
 0x25f   : > { %1863 = vst [vmem:[%s2758_s15 + $0x98] sm:$0xff] %v2949_v8  ;;  %1181 = vrot.lane.b32.xlu1 %v2949_v8, %s2510_s16  ;;  %v2187_v14 = vpack.c.bf16 %v1370_v13, %v1369_v10  ;;  %v1339_v25 = vmul.f32 %v2449_v22, %v2331_v26  ;;  %v2389_v22 = vld [vmem:[%s2915_s28 + $0x28] sm:$0xff]  }
 0x261   : > { %2188 = vmatmul.msk.bf16.gmra.mxu3 %vm2934_vm1, %v2187_v14  ;;  %v1371_v34 = vadd.f32 %v1339_v25, %v2793_v31  ;;  %v2335_v31 = vunpack.c.l.bf16 %v2387_v40  ;;  %v1160_v46 = vpop.permute.xlu2 %1159 }
 0x262   : > { %v1223_v52 = vmul.f32 1.442695, %v1160_v46 }
 0x263   : > { %v2190_v37 = vpack.c.bf16 %v1372_v32, %v1371_v34 }
 0x264   : > { %v1113_v16 = vpop.f32.mrf.mxu2 }
 0x265   : > { %v2961_v21 = vadd.f32 %v2751_v9, %v1113_v16 }
 0x267   : > { %1864 = vst [vmem:[%s2758_s15 + $0xa0] sm:$0xff] %v2961_v21  ;;  %1183 = vrot.lane.b32.xlu2 %v2961_v21, %s2510_s16 }
 0x269   : > { %v1156_v24 = vpop.permute.xlu0 %1155 }
 0x26a   : > { %v1219_v29 = vmul.f32 1.442695, %v1156_v24  ;;  %v2343_v24 = vunpack.c.l.bf16 %v2389_v22 }
 0x26c   : > { %v1115_v30 = vpop.f32.mrf.mxu2  ;;  %2450 = vpow2.f32 %v1219_v29  ;;  %v2318_v29 = vld [vmem:[%s3263_s10 + $0x28] sm:$0xff] }
 0x26d   : > { %v2969_v33 = vadd.f32 %v2751_v9, %v1115_v30  ;;  %v2344_v30 = vunpack.c.h.bf16 %v2389_v22 }
 0x26f   : > { %1865 = vst [vmem:[%s2758_s15 + $0xa8] sm:$0xff] %v2969_v33  ;;  %1185 = vrot.lane.b32.xlu0 %v2969_v33, %s2510_s16 }
 0x271   : > { %v1158_v38 = vpop.permute.xlu1 %1157  ;;  %2191 = vmatmul.msk.bf16.gmra.mxu3 %vm2934_vm1, %v2190_v37 }
 0x272   : > { %v1221_v39 = vmul.f32 1.442695, %v1158_v38  ;;  %v2451_v43 = vpop.eup %2450 }
 0x273   : > { %v1341_v47 = vmul.f32 %v2451_v43, %v2335_v31 }
 0x274   : > { %2452 = vpow2.f32 %v1221_v39  ;;  %v1118_v36 = vpop.f32.mrf.mxu2 }
 0x275   : > { %v2980_v42 = vadd.f32 %v2751_v9, %v1118_v36  ;;  %v1373_v57 = vadd.f32 %v1341_v47, %v2812_v41  ;;  %2454 = vpow2.f32 %v1223_v52  ;;  %v2320_v41 = vld [vmem:[%s3263_s10 + $0x38] sm:$0xff] }
 0x276   : > { %1723 = vmatpush.bf16.msrb.mxu0 %v2320_v41 }
 0x277   : > { %1866 = vst [vmem:[%s2758_s15 + $0xb0] sm:$0xff] %v2980_v42  ;;  %1187 = vrot.lane.b32.xlu1 %v2980_v42, %s2510_s16 }
 0x279   : > { %v1166_v7 = vpop.permute.xlu2 %1165 }
 0x27a   : > { %v2453_v49 = vpop.eup %2452  ;;  %v1229_v15 = vmul.f32 1.442695, %v1166_v7  ;;  %1724 = vmatpush.bf16.msrb.mxu0 %v2319_v44  ;;  %v2391_v7 = vld [vmem:[%s2915_s28 + $0x38] sm:$0xff]  }
 0x27b   : > { %v1342_v51 = vmul.f32 %v2453_v49, %v2336_v45  ;;  %v2455_v2 = vpop.eup %2454  ;;  %v2390_v49 = vld [vmem:[%s2915_s28 + $0x30] sm:$0xff]  }
 0x27c   : > { %v1120_v54 = vpop.f32.mrf.mxu2  ;;  %v1343_v5 = vmul.f32 %v2455_v2, %v2339_v1  ;;  %v2347_v52 = vunpack.c.l.bf16 %v2390_v49 }
 0x27d   : > { %v2987_v56 = vadd.f32 %v2751_v9, %v1120_v54  ;;  %v1374_v58 = vadd.f32 %v1342_v51, %v2824_v48 }
 0x27e   : > { %v1375_v18 = vadd.f32 %v1343_v5, %v2834_v53  ;;  %1725 = vmatpush.bf16.msrb.mxu0 %v2318_v29 }
 0x27f   : > { %1867 = vst [vmem:[%s2758_s15 + $0xb8] sm:$0xff] %v2987_v56  ;;  %1189 = vrot.lane.b32.xlu2 %v2987_v56, %s2510_s16  ;;  %v2193_v12 = vpack.c.bf16 %v1374_v58, %v1373_v57  ;;  %v2348_v57 = vunpack.c.h.bf16 %v2390_v49 }
 0x281   : > { %v1162_v60 = vpop.permute.xlu0 %1161  ;;  %2194 = vmatmul.msk.bf16.gmra.mxu3 %vm2934_vm1, %v2193_v12 }
 0x282   : > { %v1225_v61 = vmul.f32 1.442695, %v1162_v60 }
 0x284   : > { %2456 = vpow2.f32 %v1225_v61  ;;  %v1123_v63 = vpop.f32.mrf.mxu2 }
 0x285   : > { %v3002_v48 = vadd.f32 %v2751_v9, %v1123_v63 }
 0x287   : > { %1868 = vst [vmem:[%s2758_s15 + $0xc0] sm:$0xff] %v3002_v48  ;;  %1191 = vrot.lane.b32.xlu0 %v3002_v48, %s2510_s16 }
 0x289   : > { %v1164_v4 = vpop.permute.xlu1 %1163 }
 0x28a   : > { %v2457_v6 = vpop.eup %2456  ;;  %v1227_v10 = vmul.f32 1.442695, %v1164_v4 }
 0x28b   : > { %v1344_v13 = vmul.f32 %v2457_v6, %v2340_v3 }
 0x28c   : > { %v1125_v14 = vpop.f32.mrf.mxu2  ;;  %2458 = vpow2.f32 %v1227_v10 }
 0x28d   : > { %v3009_v16 = vadd.f32 %v2751_v9, %v1125_v14  ;;  %v1376_v20 = vadd.f32 %v1344_v13, %v2846_v59  ;;  %2460 = vpow2.f32 %v1229_v15  ;;  %v2351_v13 = vunpack.c.l.bf16 %v2391_v7 }
 0x28e   : > { %v2352_v15 = vunpack.c.h.bf16 %v2391_v7 }
 0x28f   : > { %1869 = vst [vmem:[%s2758_s15 + $0xc8] sm:$0xff] %v3009_v16  ;;  %1193 = vrot.lane.b32.xlu1 %v3009_v16, %s2510_s16  ;;  %v2196_v26 = vpack.c.bf16 %v1376_v20, %v1375_v18 }
 0x291   : > { %2197 = vmatmul.msk.bf16.gmra.mxu3 %vm2934_vm1, %v2196_v26  ;;  %v1172_v58 = vpop.permute.xlu2 %1171 }
 0x292   : > { %v2459_v59 = vpop.eup %2458  ;;  %v1235_v63 = vmul.f32 1.442695, %v1172_v58 }
 0x293   : > { %v2461_v32 = vpop.eup %2460  ;;  %v1345_v34 = vmul.f32 %v2459_v59, %v2343_v24  ;;  %v2314_v24 = vld [vmem:[%s3263_s10 + $0x8] sm:$0xff] }
 0x294   : > { %v1128_v53 = vpop.f32.mrf.mxu2  ;;  %v1346_v38 = vmul.f32 %v2461_v32, %v2344_v30 }
 0x295   : > { %v3024_v25 = vadd.f32 %v2751_v9, %v1128_v53  ;;  %v1377_v36 = vadd.f32 %v1345_v34, %v2856_v0  ;;  %v2317_v0 = vld [vmem:[%s3263_s10 + $0x20] sm:$0xff] }
 0x296   : > { %v1378_v43 = vadd.f32 %v1346_v38, %v2868_v28  ;;  %1726 = vmatpush.bf16.msrb.mxu0 %v2317_v0  ;;  %v2313_v38 = vld [vmem:[%s3263_s10] sm:$0xff] }
 0x297   : > { %1870 = vst [vmem:[%s2758_s15 + $0xd0] sm:$0xff] %v3024_v25  ;;  %1195 = vrot.lane.b32.xlu2 %v3024_v25, %s2510_s16 }
 0x298   : > { %v2199_v45 = vpack.c.bf16 %v1378_v43, %v1377_v36 }
 0x299   : > { %v1168_v37 = vpop.permute.xlu0 %1167 }
 0x29a   : > { %v1231_v39 = vmul.f32 1.442695, %v1168_v37  ;;  %1727 = vmatpush.bf16.msrb.mxu0 %v2316_v62 }
 0x29c   : > { %v1130_v40 = vpop.f32.mrf.mxu2  ;;  %2462 = vpow2.f32 %v1231_v39 }
 0x29d   : > { %v3035_v31 = vadd.f32 %v2751_v9, %v1130_v40 }
 0x29f   : > { %1871 = vst [vmem:[%s2758_s15 + $0xd8] sm:$0xff] %v3035_v31  ;;  %1197 = vrot.lane.b32.xlu0 %v3035_v31, %s2510_s16 }
 0x2a1   : > { %v1170_v46 = vpop.permute.xlu1 %1169  ;;  %2200 = vmatmul.msk.bf16.gmra.mxu3 %vm2934_vm1, %v2199_v45 }
 0x2a2   : > { %v1233_v47 = vmul.f32 1.442695, %v1170_v46  ;;  %v2463_v54 = vpop.eup %2462 }
 0x2a3   : > { %v1347_v12 = vmul.f32 %v2463_v54, %v2347_v52  ;;  %v2393_v52 = vld [vmem:[%s2915_s28 + $0x48] sm:$0xff]  }
 0x2a4   : > { %2464 = vpow2.f32 %v1233_v47  ;;  %v1133_v28 = vpop.f32.mrf.mxu2 }
 0x2a5   : > { %v3049_v51 = vadd.f32 %v2751_v9, %v1133_v28  ;;  %v1379_v2 = vadd.f32 %v1347_v12, %v2878_v11  ;;  %2466 = vpow2.f32 %v1235_v63  ;;  %v2315_v11 = vld [vmem:[%s3263_s10 + $0x10] sm:$0xff] }
 0x2a6   : > { %1728 = vmatpush.bf16.msrb.mxu0 %v2315_v11 }
 0x2a7   : > { %1872 = vst [vmem:[%s2758_s15 + $0xe0] sm:$0xff] %v3049_v51  ;;  %1199 = vrot.lane.b32.xlu1 %v3049_v51, %s2510_s16 }
 0x2a9   : > { %v1178_v22 = vpop.permute.xlu2 %1177 }
 0x2aa   : > { %v2465_v60 = vpop.eup %2464  ;;  %v1241_v29 = vmul.f32 1.442695, %v1178_v22  ;;  %1729 = vmatpush.bf16.msrb.mxu0 %v2314_v24 }
 0x2ab   : > { %v1348_v61 = vmul.f32 %v2465_v60, %v2348_v57  ;;  %v2467_v14 = vpop.eup %2466  ;;  %v2359_v57 = vunpack.c.l.bf16 %v2393_v52  ;;  %v2360_v60 = vunpack.c.h.bf16 %v2393_v52 }
 0x2ac   : > { %v1135_v41 = vpop.f32.mrf.mxu2  ;;  %v1349_v20 = vmul.f32 %v2467_v14, %v2351_v13  ;;  %v2394_v14 = vld [vmem:[%s2915_s28 + $0x50] sm:$0xff]  }
 0x2ad   : > { %v3059_v1 = vadd.f32 %v2751_v9, %v1135_v41  ;;  %v1380_v3 = vadd.f32 %v1348_v61, %v2890_v19  ;;  %v3106_v61 = vld [vmem:[%s3262_s9] ss:$0 sm:$0xff]  ;;  %v2364_v22 = vunpack.c.h.bf16 %v2394_v14 }
 0x2ae   : > { %v1381_v32 = vadd.f32 %v1349_v20, %v2897_v23  ;;  %1730 = vmatpush.bf16.msrb.mxu0 %v2313_v38  ;;  %v2363_v20 = vunpack.c.l.bf16 %v2394_v14 }
 0x2af   : > { %1873 = vst [vmem:[%s2758_s15 + $0xe8] sm:$0xff] %v3059_v1  ;;  %1201 = vrot.lane.b32.xlu2 %v3059_v1, %s2510_s16  ;;  %v2202_v4 = vpack.c.bf16 %v1380_v3, %v1379_v2 }
 0x2b1   : > { %v1174_v5 = vpop.permute.xlu0 %1173  ;;  %2203 = vmatmul.msk.bf16.gmra.mxu3 %vm2934_vm1, %v2202_v4 }
 0x2b2   : > { %v1237_v6 = vmul.f32 1.442695, %v1174_v5 }
 0x2b4   : > { %2468 = vpow2.f32 %v1237_v6  ;;  %v1138_v19 = vpop.f32.mrf.mxu2 }
 0x2b5   : > { %v3074_v10 = vadd.f32 %v2751_v9, %v1138_v19 }
 0x2b7   : > { %1874 = vst [vmem:[%s2758_s15 + $0xf0] sm:$0xff] %v3074_v10  ;;  %1203 = vrot.lane.b32.xlu0 %v3074_v10, %s2510_s16 }
 0x2b9   : > { %v1176_v18 = vpop.permute.xlu1 %1175 }
 0x2ba   : > { %v2469_v26 = vpop.eup %2468  ;;  %v1239_v44 = vmul.f32 1.442695, %v1176_v18 }
 0x2bb   : > { %v1350_v53 = vmul.f32 %v2469_v26, %v2352_v15 }
 0x2bc   : > { %v1140_v59 = vpop.f32.mrf.mxu2  ;;  %2470 = vpow2.f32 %v1239_v44 }
 0x2bd   : > { %v3084_v30 = vadd.f32 %v2751_v9, %v1140_v59  ;;  %v1382_v34 = vadd.f32 %v1350_v53, %v2904_v27  ;;  %2472 = vpow2.f32 %v1241_v29  ;;  %v2392_v9 = vld [vmem:[%s2915_s28 + $0x40] sm:$0xff]  }
 0x2be   : > { %v2355_v23 = vunpack.c.l.bf16 %v2392_v9  ;;  %v2356_v39 = vunpack.c.h.bf16 %v2392_v9 }
 0x2bf   : > { %1875 = vst [vmem:[%s2758_s15 + $0xf8] sm:$0xff] %v3084_v30  ;;  %1205 = vrot.lane.b32.xlu1 %v3084_v30, %s2510_s16  ;;  %v2205_v37 = vpack.c.bf16 %v1382_v34, %v1381_v32 }
 0x2c1   : > { %2206 = vmatmul.msk.bf16.gmra.mxu3 %vm2934_vm1, %v2205_v37 }
 0x2c2   : > { %v2471_v27 = vpop.eup %2470 }
 0x2c3   : > { %v2473_v40 = vpop.eup %2472  ;;  %v1351_v36 = vmul.f32 %v2471_v27, %v2355_v23 }
 0x2c4   : > { %v1352_v45 = vmul.f32 %v2473_v40, %v2356_v39 }
 0x2c5   : > { %v1383_v47 = vadd.f32 %v1351_v36, %v2919_v35  ;;  %v1184_v35 = vpop.permute.xlu2 %1183 }
 0x2c6   : > { %v1384_v49 = vadd.f32 %v1352_v45, %v2926_v50  ;;  %v1247_v41 = vmul.f32 1.442695, %v1184_v35 }
 0x2c8   : > { %v2208_v0 = vpack.c.bf16 %v1384_v49, %v1383_v47 }
 0x2c9   : > { %v1180_v43 = vpop.permute.xlu0 %1179 }
 0x2ca   : > { %v1243_v46 = vmul.f32 1.442695, %v1180_v43  ;;  %v2395_v43 = vld [vmem:[%s2915_s28 + $0x58] sm:$0xff]  }
 0x2cb   : > { %v2367_v45 = vunpack.c.l.bf16 %v2395_v43  ;;  %v2368_v49 = vunpack.c.h.bf16 %v2395_v43 }
 0x2cc   : > { %2474 = vpow2.f32 %v1243_v46 }
 0x2d1   : > { %v1182_v28 = vpop.permute.xlu1 %1181  ;;  %2209 = vmatmul.msk.bf16.gmra.mxu3 %vm2934_vm1, %v2208_v0 }
 0x2d2   : > { %v1245_v54 = vmul.f32 1.442695, %v1182_v28  ;;  %v2475_v12 = vpop.eup %2474 }
 0x2d3   : > { %v1353_v50 = vmul.f32 %v2475_v12, %v2359_v57 }
 0x2d4   : > { %2476 = vpow2.f32 %v1245_v54  ;;  %v1527_v58 = vpop.f32.mrf.mxu3 }
 0x2d5   : > { %v1528_v2 = vadd.f32 %v3106_v61, %v1527_v58  ;;  %v1385_v4 = vadd.f32 %v1353_v50, %v2942_v17  ;;  %2478 = vpow2.f32 %v1247_v41  ;;  %v2396_v41 = vld [vmem:[%s2915_s28 + $0x60] sm:$0xff]  }
 0x2d7   : > { %v1607_v11 = vmax.f32 %v1528_v2, 0.0 }
 0x2d9   : > { %v1190_v24 = vpop.permute.xlu2 %1189 }
 0x2da   : > { %v2477_v62 = vpop.eup %2476  ;;  %v1253_v34 = vmul.f32 1.442695, %v1190_v24 }
 0x2db   : > { %v1354_v63 = vmul.f32 %v2477_v62, %v2360_v60  ;;  %v2479_v17 = vpop.eup %2478 }
 0x2dc   : > { %v1529_v3 = vpop.f32.mrf.mxu3 }
 0x2dd   : > { %v1386_v5 = vadd.f32 %v1354_v63, %v2949_v8  ;;  %v1530_v6 = vadd.f32 %v3106_v61, %v1529_v3  ;;  %v1355_v8 = vmul.f32 %v2479_v17, %v2363_v20 }
 0x2df   : > { %v2211_v7 = vpack.c.bf16 %v1386_v5, %v1385_v4  ;;  %v1608_v19 = vmax.f32 %v1530_v6, 0.0  ;;  %v1387_v38 = vadd.f32 %v1355_v8, %v2961_v21  ;;  %v2371_v4 = vunpack.c.l.bf16 %v2396_v41 }
 0x2e0   : > { %v2372_v6 = vunpack.c.h.bf16 %v2396_v41 }
 0x2e1   : > { %v1186_v13 = vpop.permute.xlu0 %1185  ;;  %2212 = vmatmul.msk.bf16.gmra.mxu3 %vm2934_vm1, %v2211_v7  ;;  %v1639_v18 = vpack.c.bf16 %v1608_v19, %v1607_v11 }
 0x2e2   : > { %v1249_v15 = vmul.f32 1.442695, %v1186_v13 }
 0x2e3   : > { %1731 = vmatmul.bf16.vlgmr.msrb.gmra.mxu0 %v1639_v18 }
 0x2e4   : > { %2480 = vpow2.f32 %v1249_v15  ;;  %v1532_v26 = vpop.f32.mrf.mxu3 }
 0x2e5   : > { %v1533_v32 = vadd.f32 %v3106_v61, %v1532_v26 }
 0x2e7   : > { %v1609_v39 = vmax.f32 %v1533_v32, 0.0 }
 0x2e9   : > { %v1188_v44 = vpop.permute.xlu1 %1187 }
 0x2ea   : > { %v2481_v53 = vpop.eup %2480  ;;  %v1251_v29 = vmul.f32 1.442695, %v1188_v44 }
 0x2eb   : > { %v1356_v59 = vmul.f32 %v2481_v53, %v2364_v22  ;;  %v2397_v53 = vld [vmem:[%s2915_s28 + $0x68] sm:$0xff]  }
 0x2ec   : > { %v1534_v37 = vpop.f32.mrf.mxu3  ;;  %2482 = vpow2.f32 %v1251_v29  ;;  %v2375_v29 = vunpack.c.l.bf16 %v2397_v53 }
 0x2ed   : > { %v1388_v9 = vadd.f32 %v1356_v59, %v2969_v33  ;;  %v1535_v23 = vadd.f32 %v3106_v61, %v1534_v37  ;;  %2484 = vpow2.f32 %v1253_v34  ;;  %v2376_v34 = vunpack.c.h.bf16 %v2397_v53 }
 0x2ef   : > { %v2214_v27 = vpack.c.bf16 %v1388_v9, %v1387_v38  ;;  %v1610_v40 = vmax.f32 %v1535_v23, 0.0 }
 0x2f1   : > { %2215 = vmatmul.msk.bf16.gmra.mxu3 %vm2934_vm1, %v2214_v27  ;;  %v1640_v36 = vpack.c.bf16 %v1610_v40, %v1609_v39  ;;  %v1196_v7 = vpop.permute.xlu2 %1195 }
 0x2f2   : > { %v2483_v46 = vpop.eup %2482  ;;  %v1259_v13 = vmul.f32 1.442695, %v1196_v7 }
 0x2f3   : > { %1736 = vmatmul.bf16.gmra.mxu0 %v1640_v36  ;;  %v2485_v21 = vpop.eup %2484  ;;  %v1357_v33 = vmul.f32 %v2483_v46, %v2367_v45 }
 0x2f4   : > { %v1537_v47 = vpop.f32.mrf.mxu3  ;;  %v1358_v28 = vmul.f32 %v2485_v21, %v2368_v49 }
 0x2f5   : > { %v1538_v52 = vadd.f32 %v3106_v61, %v1537_v47  ;;  %v1389_v57 = vadd.f32 %v1357_v33, %v2980_v42 }
 0x2f6   : > { %v1390_v60 = vadd.f32 %v1358_v28, %v2987_v56 }
 0x2f7   : > { %v1611_v35 = vmax.f32 %v1538_v52, 0.0 }
 0x2f8   : > { %v2217_v62 = vpack.c.bf16 %v1390_v60, %v1389_v57 }
 0x2f9   : > { %v1192_v0 = vpop.permute.xlu0 %1191 }
 0x2fa   : > { %v1255_v54 = vmul.f32 1.442695, %v1192_v0  ;;  %v2398_v0 = vld [vmem:[%s2915_s28 + $0x70] sm:$0xff]  }
 0x2fb   : > { %v2379_v28 = vunpack.c.l.bf16 %v2398_v0  ;;  %v2380_v57 = vunpack.c.h.bf16 %v2398_v0 }
 0x2fc   : > { %v1539_v58 = vpop.f32.mrf.mxu3  ;;  %2486 = vpow2.f32 %v1255_v54 }
 0x2fd   : > { %v1540_v12 = vadd.f32 %v3106_v61, %v1539_v58 }
 0x2ff   : > { %v1612_v50 = vmax.f32 %v1540_v12, 0.0 }
 0x301   : > { %v1194_v63 = vpop.permute.xlu1 %1193  ;;  %2218 = vmatmul.msk.bf16.gmra.mxu3 %vm2934_vm1, %v2217_v62  ;;  %v1641_v3 = vpack.c.bf16 %v1612_v50, %v1611_v35 }
 0x302   : > { %v1257_v2 = vmul.f32 1.442695, %v1194_v63  ;;  %v2487_v5 = vpop.eup %2486 }
 0x303   : > { %1741 = vmatmul.bf16.gmra.mxu0 %v1641_v3  ;;  %v1359_v56 = vmul.f32 %v2487_v5, %v2371_v4  ;;  %v2399_v5 = vld [vmem:[%s2915_s28 + $0x78] sm:$0xff]  }
 0x304   : > { %2488 = vpow2.f32 %v1257_v2  ;;  %v1542_v42 = vpop.f32.mrf.mxu3 }
 0x305   : > { %v1543_v14 = vadd.f32 %v3106_v61, %v1542_v42  ;;  %v1391_v18 = vadd.f32 %v1359_v56, %v3002_v48  ;;  %2490 = vpow2.f32 %v1259_v13  ;;  %v2383_v56 = vunpack.c.l.bf16 %v2399_v5 }
 0x307   : > { %v1613_v22 = vmax.f32 %v1543_v14, 0.0 }
 0x309   : > { %v1202_v9 = vpop.permute.xlu2 %1201 }
 0x30a   : > { %v2489_v11 = vpop.eup %2488  ;;  %v1265_v40 = vmul.f32 1.442695, %v1202_v9 }
 0x30b   : > { %v1360_v19 = vmul.f32 %v2489_v11, %v2372_v6  ;;  %v2491_v48 = vpop.eup %2490 }
 0x30c   : > { %v1544_v15 = vpop.f32.mrf.mxu3 }
 0x30d   : > { %v1392_v20 = vadd.f32 %v1360_v19, %v3009_v16  ;;  %v1545_v26 = vadd.f32 %v3106_v61, %v1544_v15  ;;  %v1361_v16 = vmul.f32 %v2491_v48, %v2375_v29  ;;  %v2384_v19 = vunpack.c.h.bf16 %v2399_v5 }
 0x30f   : > { %v2220_v17 = vpack.c.bf16 %v1392_v20, %v1391_v18  ;;  %v1614_v8 = vmax.f32 %v1545_v26, 0.0  ;;  %v1393_v43 = vadd.f32 %v1361_v16, %v3024_v25 }
 0x311   : > { %v1198_v44 = vpop.permute.xlu0 %1197  ;;  %2221 = vmatmul.msk.bf16.gmra.mxu3 %vm2934_vm1, %v2220_v17  ;;  %v1642_v59 = vpack.c.bf16 %v1614_v8, %v1613_v22 }
 0x312   : > { %v1261_v24 = vmul.f32 1.442695, %v1198_v44 }
 0x313   : > { %1746 = vmatmul.bf16.gmra.mxu0 %v1642_v59 }
 0x314   : > { %2492 = vpow2.f32 %v1261_v24  ;;  %v1547_v32 = vpop.f32.mrf.mxu3 }
 0x315   : > { %v1548_v39 = vadd.f32 %v3106_v61, %v1547_v32 }
 0x317   : > { %v1615_v49 = vmax.f32 %v1548_v39, 0.0 }
 0x319   : > { %v1200_v37 = vpop.permute.xlu1 %1199 }
 0x31a   : > { %v2493_v38 = vpop.eup %2492  ;;  %v1263_v27 = vmul.f32 1.442695, %v1200_v37 }
 0x31b   : > { %v1362_v23 = vmul.f32 %v2493_v38, %v2376_v34  ;;  %v3163_v38 = vld [vmem:[%s3264_s11] ss:$0 sm:$0xff] }
 0x31c   : > { %v1549_v36 = vpop.f32.mrf.mxu3  ;;  %2494 = vpow2.f32 %v1263_v27 }
 0x31d   : > { %v1394_v45 = vadd.f32 %v1362_v23, %v3035_v31  ;;  %v1550_v46 = vadd.f32 %v3106_v61, %v1549_v36  ;;  %2496 = vpow2.f32 %v1265_v40 }
 0x31f   : > { %v2223_v47 = vpack.c.bf16 %v1394_v45, %v1393_v43  ;;  %v1616_v21 = vmax.f32 %v1550_v46, 0.0 }
 0x321   : > { %2224 = vmatmul.msk.bf16.gmra.mxu3 %vm2934_vm1, %v2223_v47  ;;  %v1643_v33 = vpack.c.bf16 %v1616_v21, %v1615_v49 }
 0x322   : > { %v2495_v52 = vpop.eup %2494 }
 0x323   : > { %1751 = vmatmul.bf16.gmra.mxu0 %v1643_v33  ;;  %v2497_v25 = vpop.eup %2496  ;;  %v1363_v31 = vmul.f32 %v2495_v52, %v2379_v28 }
 0x324   : > { %v1552_v54 = vpop.f32.mrf.mxu3  ;;  %v1364_v12 = vmul.f32 %v2497_v25, %v2380_v57 }
 0x325   : > { %v1553_v60 = vadd.f32 %v3106_v61, %v1552_v54  ;;  %v1395_v50 = vadd.f32 %v1363_v31, %v3049_v51 }
 0x326   : > { %v1396_v63 = vadd.f32 %v1364_v12, %v3059_v1 }
 0x327   : > { %v1617_v2 = vmax.f32 %v1553_v60, 0.0 }
 0x328   : > { %v2226_v4 = vpack.c.bf16 %v1396_v63, %v1395_v50 }
 0x329   : > { %v1204_v58 = vpop.permute.xlu0 %1203 }
 0x32a   : > { %v1267_v35 = vmul.f32 1.442695, %v1204_v58 }
 0x32c   : > { %v1554_v62 = vpop.f32.mrf.mxu3  ;;  %2498 = vpow2.f32 %v1267_v35 }
 0x32d   : > { %v1555_v41 = vadd.f32 %v3106_v61, %v1554_v62 }
 0x32f   : > { %v1618_v3 = vmax.f32 %v1555_v41, 0.0 }
 0x331   : > { %v1206_v42 = vpop.permute.xlu1 %1205  ;;  %2227 = vmatmul.msk.bf16.gmra.mxu3 %vm2934_vm1, %v2226_v4  ;;  %v1644_v7 = vpack.c.bf16 %v1618_v3, %v1617_v2 }
 0x332   : > { %v1269_v6 = vmul.f32 1.442695, %v1206_v42  ;;  %v2499_v11 = vpop.eup %2498 }
 0x333   : > { %1756 = vmatmul.bf16.gmra.mxu0 %v1644_v7  ;;  %v1365_v1 = vmul.f32 %v2499_v11, %v2383_v56 }
 0x334   : > { %2500 = vpow2.f32 %v1269_v6  ;;  %v1557_v51 = vpop.f32.mrf.mxu3 }
 0x335   : > { %v1558_v15 = vadd.f32 %v3106_v61, %v1557_v51  ;;  %v1397_v18 = vadd.f32 %v1365_v1, %v3074_v10 }
 0x337   : > { %v1619_v8 = vmax.f32 %v1558_v15, 0.0 }
 0x33a   : > { %v2501_v13 = vpop.eup %2500 }
 0x33b   : > { %v1366_v14 = vmul.f32 %v2501_v13, %v2384_v19 }
 0x33c   : > { %v1559_v26 = vpop.f32.mrf.mxu3 }
 0x33d   : > { %v1398_v20 = vadd.f32 %v1366_v14, %v3084_v30  ;;  %v1560_v17 = vadd.f32 %v3106_v61, %v1559_v26 }
 0x33f   : > { %v2229_v22 = vpack.c.bf16 %v1398_v20, %v1397_v18  ;;  %v1620_v44 = vmax.f32 %v1560_v17, 0.0 }
 0x341   : > { %2230 = vmatmul.msk.bf16.gmra.mxu3 %vm2934_vm1, %v2229_v22  ;;  %v1645_v53 = vpack.c.bf16 %v1620_v44, %v1619_v8 }
 0x343   : > { %1761 = vmatmul.bf16.gmra.mxu0 %v1645_v53 }
 0x344   : > { %v1562_v24 = vpop.f32.mrf.mxu3 }
 0x345   : > { %v1563_v59 = vadd.f32 %v3106_v61, %v1562_v24 }
 0x347   : > { %v1621_v32 = vmax.f32 %v1563_v59, 0.0 }
 0x34c   : > { %v1564_v29 = vpop.f32.mrf.mxu3 }
 0x34d   : > { %v1565_v10 = vadd.f32 %v3106_v61, %v1564_v29 }
 0x34f   : > { %v1622_v30 = vmax.f32 %v1565_v10, 0.0 }
 0x351   : > { %v1646_v48 = vpack.c.bf16 %v1622_v30, %v1621_v32 }
 0x353   : > { %1766 = vmatmul.bf16.gmra.mxu0 %v1646_v48 }
 0x354   : > { %v1567_v34 = vpop.f32.mrf.mxu3 }
 0x355   : > { %v1568_v16 = vadd.f32 %v3106_v61, %v1567_v34 }
 0x357   : > { %v1623_v9 = vmax.f32 %v1568_v16, 0.0 }
 0x35c   : > { %v1569_v37 = vpop.f32.mrf.mxu3 }
 0x35d   : > { %v1570_v55 = vadd.f32 %v3106_v61, %v1569_v37 }
 0x35f   : > { %v1624_v23 = vmax.f32 %v1570_v55, 0.0 }
 0x360   : > { %v1732_v27 = vpop.f32.mrf.mxu0 }
 0x361   : > { %v1647_v39 = vpack.c.bf16 %v1624_v23, %v1623_v9  ;;  %v1733_v40 = vadd.f32 %v3163_v38, %v1732_v27 }
 0x363   : > { %1812 = vst [vmem:[%s3170_s22] sm:$0xff] %v1733_v40  ;;  %1771 = vmatmul.bf16.gmra.mxu0 %v1647_v39 }
 0x364   : > { %v1572_v36 = vpop.f32.mrf.mxu3 }
 0x365   : > { %v1573_v46 = vadd.f32 %v3106_v61, %v1572_v36 }
 0x367   : > { %v1625_v21 = vmax.f32 %v1573_v46, 0.0 }
 0x368   : > { %v1734_v43 = vpop.f32.mrf.mxu0 }
 0x369   : > { %v1735_v45 = vadd.f32 %v3163_v38, %v1734_v43 }
 0x36b   : > { %1813 = vst [vmem:[%s3170_s22 + $0x8] sm:$0xff] %v1735_v45 }
 0x36c   : > { %v1574_v47 = vpop.f32.mrf.mxu3 }
 0x36d   : > { %v1575_v49 = vadd.f32 %v3106_v61, %v1574_v47 }
 0x36f   : > { %v1626_v33 = vmax.f32 %v1575_v49, 0.0 }
 0x370   : > { %v1737_v0 = vpop.f32.mrf.mxu0 }
 0x371   : > { %v1648_v28 = vpack.c.bf16 %v1626_v33, %v1625_v21  ;;  %v1738_v52 = vadd.f32 %v3163_v38, %v1737_v0 }
 0x373   : > { %1814 = vst [vmem:[%s3170_s22 + $0x10] sm:$0xff] %v1738_v52  ;;  %1776 = vmatmul.bf16.gmra.mxu0 %v1648_v28 }
 0x374   : > { %v1577_v54 = vpop.f32.mrf.mxu3 }
 0x375   : > { %v1578_v31 = vadd.f32 %v3106_v61, %v1577_v54 }
 0x377   : > { %v1627_v60 = vmax.f32 %v1578_v31, 0.0 }
 0x378   : > { %v1739_v57 = vpop.f32.mrf.mxu0 }
 0x379   : > { %v1740_v25 = vadd.f32 %v3163_v38, %v1739_v57 }
 0x37b   : > { %1815 = vst [vmem:[%s3170_s22 + $0x18] sm:$0xff] %v1740_v25 }
 0x37c   : > { %v1579_v58 = vpop.f32.mrf.mxu3 }
 0x37d   : > { %v1580_v12 = vadd.f32 %v3106_v61, %v1579_v58 }
 0x37f   : > { %v1628_v35 = vmax.f32 %v1580_v12, 0.0 }
 0x380   : > { %v1742_v50 = vpop.f32.mrf.mxu0 }
 0x381   : > { %v1649_v62 = vpack.c.bf16 %v1628_v35, %v1627_v60  ;;  %v1743_v63 = vadd.f32 %v3163_v38, %v1742_v50 }
 0x383   : > { %1816 = vst [vmem:[%s3170_s22 + $0x20] sm:$0xff] %v1743_v63  ;;  %1781 = vmatmul.bf16.gmra.mxu0 %v1649_v62 }
 0x384   : > { %v1582_v41 = vpop.f32.mrf.mxu3 }
 0x385   : > { %v1583_v4 = vadd.f32 %v3106_v61, %v1582_v41 }
 0x387   : > { %v1629_v6 = vmax.f32 %v1583_v4, 0.0 }
 0x388   : > { %v1744_v2 = vpop.f32.mrf.mxu0 }
 0x389   : > { %v1745_v3 = vadd.f32 %v3163_v38, %v1744_v2 }
 0x38b   : > { %1817 = vst [vmem:[%s3170_s22 + $0x28] sm:$0xff] %v1745_v3 }
 0x38c   : > { %v1584_v42 = vpop.f32.mrf.mxu3 }
 0x38d   : > { %v1585_v5 = vadd.f32 %v3106_v61, %v1584_v42 }
 0x38f   : > { %v1630_v7 = vmax.f32 %v1585_v5, 0.0 }
 0x390   : > { %v1747_v56 = vpop.f32.mrf.mxu0 }
 0x391   : > { %v1650_v51 = vpack.c.bf16 %v1630_v7, %v1629_v6  ;;  %v1748_v11 = vadd.f32 %v3163_v38, %v1747_v56 }
 0x393   : > { %1818 = vst [vmem:[%s3170_s22 + $0x30] sm:$0xff] %v1748_v11  ;;  %1786 = vmatmul.bf16.gmra.mxu0 %v1650_v51 }
 0x394   : > { %v1587_v19 = vpop.f32.mrf.mxu3 }
 0x395   : > { %v1588_v14 = vadd.f32 %v3106_v61, %v1587_v19 }
 0x397   : > { %v1631_v20 = vmax.f32 %v1588_v14, 0.0 }
 0x398   : > { %v1749_v1 = vpop.f32.mrf.mxu0 }
 0x399   : > { %v1750_v13 = vadd.f32 %v3163_v38, %v1749_v1 }
 0x39b   : > { %1819 = vst [vmem:[%s3170_s22 + $0x38] sm:$0xff] %v1750_v13 }
 0x39c   : > { %v1589_v15 = vpop.f32.mrf.mxu3 }
 0x39d   : > { %v1590_v18 = vadd.f32 %v3106_v61, %v1589_v15 }
 0x39f   : > { %v1632_v26 = vmax.f32 %v1590_v18, 0.0 }
 0x3a0   : > { %v1752_v17 = vpop.f32.mrf.mxu0 }
 0x3a1   : > { %v1651_v22 = vpack.c.bf16 %v1632_v26, %v1631_v20  ;;  %v1753_v8 = vadd.f32 %v3163_v38, %v1752_v17 }
 0x3a3   : > { %1820 = vst [vmem:[%s3170_s22 + $0x40] sm:$0xff] %v1753_v8  ;;  %1791 = vmatmul.bf16.gmra.mxu0 %v1651_v22 }
 0x3a4   : > { %v1592_v44 = vpop.f32.mrf.mxu3 }
 0x3a5   : > { %v1593_v59 = vadd.f32 %v3106_v61, %v1592_v44 }
 0x3a7   : > { %v1633_v32 = vmax.f32 %v1593_v59, 0.0 }
 0x3a8   : > { %v1754_v53 = vpop.f32.mrf.mxu0 }
 0x3a9   : > { %v1755_v24 = vadd.f32 %v3163_v38, %v1754_v53 }
 0x3ab   : > { %1821 = vst [vmem:[%s3170_s22 + $0x48] sm:$0xff] %v1755_v24 }
 0x3ac   : > { %v1594_v29 = vpop.f32.mrf.mxu3 }
 0x3ad   : > { %v1595_v10 = vadd.f32 %v3106_v61, %v1594_v29 }
 0x3af   : > { %v1634_v30 = vmax.f32 %v1595_v10, 0.0 }
 0x3b0   : > { %v1757_v48 = vpop.f32.mrf.mxu0 }
 0x3b1   : > { %v1652_v34 = vpack.c.bf16 %v1634_v30, %v1633_v32  ;;  %v1758_v16 = vadd.f32 %v3163_v38, %v1757_v48 }
 0x3b3   : > { %1822 = vst [vmem:[%s3170_s22 + $0x50] sm:$0xff] %v1758_v16  ;;  %1796 = vmatmul.bf16.gmra.mxu0 %v1652_v34 }
 0x3b4   : > { %v1597_v37 = vpop.f32.mrf.mxu3 }
 0x3b5   : > { %v1598_v23 = vadd.f32 %v3106_v61, %v1597_v37 }
 0x3b7   : > { %v1635_v40 = vmax.f32 %v1598_v23, 0.0 }
 0x3b8   : > { %v1759_v55 = vpop.f32.mrf.mxu0 }
 0x3b9   : > { %v1760_v9 = vadd.f32 %v3163_v38, %v1759_v55 }
 0x3bb   : > { %1823 = vst [vmem:[%s3170_s22 + $0x58] sm:$0xff] %v1760_v9 }
 0x3bc   : > { %v1599_v27 = vpop.f32.mrf.mxu3 }
 0x3bd   : > { %v1600_v39 = vadd.f32 %v3106_v61, %v1599_v27 }
 0x3bf   : > { %v1636_v36 = vmax.f32 %v1600_v39, 0.0 }
 0x3c0   : > { %v1762_v43 = vpop.f32.mrf.mxu0 }
 0x3c1   : > { %v1653_v45 = vpack.c.bf16 %v1636_v36, %v1635_v40  ;;  %v1763_v46 = vadd.f32 %v3163_v38, %v1762_v43 }
 0x3c3   : > { %1824 = vst [vmem:[%s3170_s22 + $0x60] sm:$0xff] %v1763_v46  ;;  %1801 = vmatmul.bf16.gmra.mxu0 %v1653_v45 }
 0x3c4   : > { %v1602_v47 = vpop.f32.mrf.mxu3 }
 0x3c5   : > { %v1603_v33 = vadd.f32 %v3106_v61, %v1602_v47 }
 0x3c7   : > { %v1637_v52 = vmax.f32 %v1603_v33, 0.0 }
 0x3c8   : > { %v1764_v49 = vpop.f32.mrf.mxu0 }
 0x3c9   : > { %v1765_v21 = vadd.f32 %v3163_v38, %v1764_v49 }
 0x3cb   : > { %1825 = vst [vmem:[%s3170_s22 + $0x68] sm:$0xff] %v1765_v21 }
 0x3cc   : > { %v1604_v0 = vpop.f32.mrf.mxu3 }
 0x3cd   : > { %v1605_v28 = vadd.f32 %v3106_v61, %v1604_v0 }
 0x3cf   : > { %v1638_v54 = vmax.f32 %v1605_v28, 0.0 }
 0x3d0   : > { %v1767_v57 = vpop.f32.mrf.mxu0 }
 0x3d1   : > { %v1654_v25 = vpack.c.bf16 %v1638_v54, %v1637_v52  ;;  %v1768_v31 = vadd.f32 %v3163_v38, %v1767_v57 }
 0x3d3   : > { %1826 = vst [vmem:[%s3170_s22 + $0x70] sm:$0xff] %v1768_v31  ;;  %1806 = vmatmul.bf16.gmra.mxu0 %v1654_v25 }
 0x3d8   : > { %v1769_v58 = vpop.f32.mrf.mxu0 }
 0x3d9   : > { %v1770_v12 = vadd.f32 %v3163_v38, %v1769_v58 }
 0x3db   : > { %1827 = vst [vmem:[%s3170_s22 + $0x78] sm:$0xff] %v1770_v12 }
 0x3e0   : > { %v1772_v60 = vpop.f32.mrf.mxu0 }
 0x3e1   : > { %v1773_v35 = vadd.f32 %v3163_v38, %v1772_v60 }
 0x3e3   : > { %1828 = vst [vmem:[%s3170_s22 + $0x80] sm:$0xff] %v1773_v35 }
 0x3e8   : > { %v1774_v61 = vpop.f32.mrf.mxu0 }
 0x3e9   : > { %v1775_v50 = vadd.f32 %v3163_v38, %v1774_v61 }
 0x3eb   : > { %1829 = vst [vmem:[%s3170_s22 + $0x88] sm:$0xff] %v1775_v50 }
 0x3f0   : > { %v1777_v62 = vpop.f32.mrf.mxu0 }
 0x3f1   : > { %v1778_v63 = vadd.f32 %v3163_v38, %v1777_v62 }
 0x3f3   : > { %1830 = vst [vmem:[%s3170_s22 + $0x90] sm:$0xff] %v1778_v63 }
 0x3f8   : > { %v1779_v41 = vpop.f32.mrf.mxu0 }
 0x3f9   : > { %v1780_v2 = vadd.f32 %v3163_v38, %v1779_v41 }
 0x3fb   : > { %1831 = vst [vmem:[%s3170_s22 + $0x98] sm:$0xff] %v1780_v2 }
 0x400   : > { %v1782_v3 = vpop.f32.mrf.mxu0 }
 0x401   : > { %v1783_v4 = vadd.f32 %v3163_v38, %v1782_v3 }
 0x403   : > { %1832 = vst [vmem:[%s3170_s22 + $0xa0] sm:$0xff] %v1783_v4 }
 0x408   : > { %v1784_v42 = vpop.f32.mrf.mxu0 }
 0x409   : > { %v1785_v5 = vadd.f32 %v3163_v38, %v1784_v42 }
 0x40b   : > { %1833 = vst [vmem:[%s3170_s22 + $0xa8] sm:$0xff] %v1785_v5 }
 0x410   : > { %v1787_v6 = vpop.f32.mrf.mxu0 }
 0x411   : > { %v1788_v7 = vadd.f32 %v3163_v38, %v1787_v6 }
 0x413   : > { %1834 = vst [vmem:[%s3170_s22 + $0xb0] sm:$0xff] %v1788_v7 }
 0x418   : > { %v1789_v56 = vpop.f32.mrf.mxu0 }
 0x419   : > { %v1790_v51 = vadd.f32 %v3163_v38, %v1789_v56 }
 0x41b   : > { %1835 = vst [vmem:[%s3170_s22 + $0xb8] sm:$0xff] %v1790_v51 }
 0x420   : > { %v1792_v11 = vpop.f32.mrf.mxu0 }
 0x421   : > { %v1793_v19 = vadd.f32 %v3163_v38, %v1792_v11 }
 0x423   : > { %1836 = vst [vmem:[%s3170_s22 + $0xc0] sm:$0xff] %v1793_v19 }
 0x428   : > { %v1794_v1 = vpop.f32.mrf.mxu0 }
 0x429   : > { %v1795_v13 = vadd.f32 %v3163_v38, %v1794_v1 }
 0x42b   : > { %1837 = vst [vmem:[%s3170_s22 + $0xc8] sm:$0xff] %v1795_v13 }
 0x430   : > { %v1797_v14 = vpop.f32.mrf.mxu0 }
 0x431   : > { %v1798_v15 = vadd.f32 %v3163_v38, %v1797_v14 }
 0x433   : > { %1838 = vst [vmem:[%s3170_s22 + $0xd0] sm:$0xff] %v1798_v15 }
 0x438   : > { %v1799_v18 = vpop.f32.mrf.mxu0 }
 0x439   : > { %v1800_v20 = vadd.f32 %v3163_v38, %v1799_v18 }
 0x43b   : > { %1839 = vst [vmem:[%s3170_s22 + $0xd8] sm:$0xff] %v1800_v20 }
 0x440   : > { %v1802_v26 = vpop.f32.mrf.mxu0 }
 0x441   : > { %v1803_v17 = vadd.f32 %v3163_v38, %v1802_v26 }
 0x443   : > { %1840 = vst [vmem:[%s3170_s22 + $0xe0] sm:$0xff] %v1803_v17 }
 0x448   : > { %v1804_v22 = vpop.f32.mrf.mxu0 }
 0x449   : > { %v1805_v8 = vadd.f32 %v3163_v38, %v1804_v22 }
 0x44b   : > { %1841 = vst [vmem:[%s3170_s22 + $0xe8] sm:$0xff] %v1805_v8 }
 0x450   : > { %v1807_v44 = vpop.f32.mrf.mxu0 }
 0x451   : > { %v1808_v53 = vadd.f32 %v3163_v38, %v1807_v44 }
 0x453   : > { %1842 = vst [vmem:[%s3170_s22 + $0xf0] sm:$0xff] %v1808_v53 }
 0x458   : > { %v1809_v24 = vpop.f32.mrf.mxu0 }
 0x459   : > { %v1810_v59 = vadd.f32 %v3163_v38, %v1809_v24 }
 0x45b   : > { %1843 = vst [vmem:[%s3170_s22 + $0xf8] sm:$0xff] %v1810_v59 }
 0x45c PF: > { %s24_s25 = sadd.s32 1, %s2508_s25  }
 0x45d   : > { %p21_p4 = scmp.ge.s32.totalorder %s24_s25, 4  }
 0x45f   :  { %23 = sbr.rel (!%p21_p4) target bundleno = 1 (0x1), region = 113 }

</bundles_post_ra>
